<compile_context>
chip_gen: v7x
topology: tpu7x:2x2x1
jax: 0.10.0
libtpu: 0.0.40
codegen_flags: <defaults>
</compile_context>

<pallas_src>
import functools

import jax
import jax.numpy as jnp
from jax.experimental import pallas as pl
from jax.experimental.pallas import tpu as pltpu

BN_EPS = 1e-5


def _se_conv_bn_kernel(xse_ref, w1_ref, b1_ref, x_ref, w2_ref,
                       gamma_ref, beta_ref, o_ref):
    # ---- SE branch: relu -> 1x1 conv (matmul) -> sigmoid -------------------
    # The SE scale lives in conv2's *input*-channel space, so the full [1, C]
    # vector is needed for every output-channel tile. Recomputing it per grid
    # step is ~1% of the per-step MXU work and keeps the grid axis free of
    # cross-step dependencies (so it can be marked "parallel" for v7x).
    se = jnp.maximum(xse_ref[...], 0.0)                                 # [1, Cin]
    logits = jnp.dot(se, w1_ref[...],
                     preferred_element_type=jnp.float32) + b1_ref[...]  # [1, C]
    scale = jax.nn.sigmoid(logits)                                      # [1, C]

    # ---- Per-channel gating of the main feature map ------------------------
    gated = x_ref[...] * scale                                          # [P, C]

    # ---- 1x1 conv (no bias), one output-channel tile: [P, C] @ [C, TN] ------
    y = jnp.dot(gated, w2_ref[...],
                preferred_element_type=jnp.float32)                     # [P, TN]

    # ---- BatchNorm2d (training-mode batch stats), fused one-pass + affine ---
    inv_p = 1.0 / y.shape[0]
    s = jnp.sum(y, axis=0, keepdims=True)                               # [1, TN]
    ss = jnp.sum(y * y, axis=0, keepdims=True)                          # [1, TN]
    mean = s * inv_p
    var = jnp.maximum(ss * inv_p - mean * mean, 0.0)
    a = jax.lax.rsqrt(var + BN_EPS) * gamma_ref[...]
    b = beta_ref[...] - mean * a
    o_ref[...] = y * a + b                                              # [P, TN]


@jax.jit
def se_conv_bn(x113, x111, w1, b1, w2, gamma, beta):
    """Pallas implementation of M.forward.

    x113: [N, C_in, 1, 1]    (SE squeeze vector, NCHW)
    x111: [N, C, H, W]       (main feature map, NCHW)
    w1:   [C, C_in]          conv2d37 weight (1x1) squeezed
    b1:   [C]                conv2d37 bias
    w2:   [C, C]             conv2d38 weight (1x1) squeezed, no bias
    gamma, beta: [C]         BatchNorm2d affine params
    """
    N, C, H, W = x111.shape
    Cin = x113.shape[1]
    if N != 1:
        # TODO(synk): for N > 1 the SE scale must be broadcast per batch row
        # (grid over N with cross-batch BN accumulation); module spec is N==1.
        raise NotImplementedError("se_conv_bn kernel supports N == 1 only")
    P = N * H * W

    # NCHW -> channels-last slabs for the kernel.
    x_pc = jnp.transpose(x111, (0, 2, 3, 1)).reshape(P, C)   # [P, C]
    xse = x113.reshape(N, Cin)                                # [1, Cin]

    w1_t = jnp.transpose(w1, (1, 0))                          # [Cin, C]
    b1_r = b1.reshape(1, C)
    w2_t = jnp.transpose(w2, (1, 0))                          # [C, C]
    gamma_r = gamma.reshape(1, C)
    beta_r = beta.reshape(1, C)

    # Output-channel tile for the second matmul (C = 896 = 7 * 128).
    TN = 128 if C % 128 == 0 else C
    grid = (C // TN,)

    resident = lambda j: (0, 0)   # same block every step -> fetched once
    by_col = lambda j: (0, j)     # conv2 output-channel tile

    out = pl.pallas_call(
        _se_conv_bn_kernel,
        out_shape=jax.ShapeDtypeStruct((P, C), jnp.float32),
        grid=grid,
        in_specs=[
            pl.BlockSpec((N, Cin), resident),    # xse      (resident)
            pl.BlockSpec((Cin, C), resident),    # w1_t     (resident; conv2-input space)
            pl.BlockSpec((1, C), resident),      # b1       (resident; conv2-input space)
            pl.BlockSpec((P, C), resident),      # x_pc     (resident)
            pl.BlockSpec((C, TN), by_col),       # w2_t     column tile (pipelined)
            pl.BlockSpec((1, TN), by_col),       # gamma    tile (conv2-output space)
            pl.BlockSpec((1, TN), by_col),       # beta     tile (conv2-output space)
        ],
        out_specs=pl.BlockSpec((P, TN), by_col),
        compiler_params=pltpu.CompilerParams(
            dimension_semantics=("parallel",)),
    )(xse, w1_t, b1_r, x_pc, w2_t, gamma_r, beta_r)

    # Back to NCHW.
    return jnp.transpose(out.reshape(N, H, W, C), (0, 3, 1, 2))


def _reference(x113, x111, w1, b1, w2, gamma, beta):
    """Pure-JAX reference mirroring the PyTorch module (training-mode BN)."""
    N, C, H, W = x111.shape
    se = jnp.maximum(x113.reshape(N, -1), 0.0)
    s = jax.nn.sigmoid(se @ w1.T + b1)                        # [N, C]
    gated = x111 * s.reshape(N, C, 1, 1)                      # [N, C, H, W]
    # 1x1 conv: einsum over channel dim.
    y = jnp.einsum('oc,nchw->nohw', w2, gated)
    mean = jnp.mean(y, axis=(0, 2, 3), keepdims=True)
    var = jnp.mean((y - mean) ** 2, axis=(0, 2, 3), keepdims=True)
    return (y - mean) / jnp.sqrt(var + BN_EPS) * gamma.reshape(1, C, 1, 1) \
        + beta.reshape(1, C, 1, 1)


if __name__ == "__main__":
    key = jax.random.PRNGKey(0)
    k1, k2, k3, k4, k5 = jax.random.split(key, 5)

    N, C_IN, C, H, W = 1, 112, 896, 14, 14

    # Inputs (match the module's tensors: x113 [1,112,1,1], x111 [1,896,14,14]).
    x113 = jax.random.normal(k1, (N, C_IN, 1, 1), dtype=jnp.float32)
    x111 = jax.random.normal(k2, (N, C, H, W), dtype=jnp.float32)

    # Deterministic synthetic parameters.
    w1 = jax.random.normal(k3, (C, C_IN), dtype=jnp.float32) * 0.05   # conv2d37 weight
    b1 = jax.random.normal(k4, (C,), dtype=jnp.float32) * 0.05        # conv2d37 bias
    w2 = jax.random.normal(k5, (C, C), dtype=jnp.float32) * 0.02      # conv2d38 weight
    gamma = jnp.ones((C,), dtype=jnp.float32)                          # BN weight
    beta = jnp.zeros((C,), dtype=jnp.float32)                          # BN bias

    out = se_conv_bn(x113, x111, w1, b1, w2, gamma, beta)
    out = jax.block_until_ready(out)

    ref = _reference(x113, x111, w1, b1, w2, gamma, beta)
    assert out.shape == (N, C, H, W), out.shape
    assert jnp.allclose(out, ref, atol=2e-3, rtol=2e-3), \
        float(jnp.max(jnp.abs(out - ref)))

    print("KERNEL_OK")
</pallas_src>

<mosaic_0001>
module attributes {stable_mosaic.version = 11 : i64} {
  func.func @_se_conv_bn_kernel(%arg0: i32, %arg1: memref<1x112xf32, #tpu.memory_space<vmem>>, %arg2: memref<112x896xf32, #tpu.memory_space<vmem>>, %arg3: memref<1x896xf32, #tpu.memory_space<vmem>>, %arg4: memref<196x896xf32, #tpu.memory_space<vmem>>, %arg5: memref<896x128xf32, #tpu.memory_space<vmem>>, %arg6: memref<1x128xf32, #tpu.memory_space<vmem>>, %arg7: memref<1x128xf32, #tpu.memory_space<vmem>>, %arg8: memref<196x128xf32, #tpu.memory_space<vmem>>) attributes {dimension_semantics = [#tpu.dimension_semantics<parallel>], iteration_bounds = array<i64: 7>, scalar_prefetch = 0 : i64, scratch_operands = 0 : i64, tpu.core_type = #tpu.core_type<tc>, window_params = [{pipeline_mode = #tpu.pipeline_mode<synchronous>, transform_indices = @transform_0, window_bounds = array<i64: 1, 112>}, {pipeline_mode = #tpu.pipeline_mode<synchronous>, transform_indices = @transform_1, window_bounds = array<i64: 112, 896>}, {pipeline_mode = #tpu.pipeline_mode<synchronous>, transform_indices = @transform_2, window_bounds = array<i64: 1, 896>}, {pipeline_mode = #tpu.pipeline_mode<synchronous>, transform_indices = @transform_3, window_bounds = array<i64: 196, 896>}, {transform_indices = @transform_4, window_bounds = array<i64: 896, 128>}, {transform_indices = @transform_5, window_bounds = array<i64: 1, 128>}, {transform_indices = @transform_6, window_bounds = array<i64: 1, 128>}, {transform_indices = @transform_7, window_bounds = array<i64: 196, 128>}]} {
    %c0 = arith.constant 0 : index
    %c0_0 = arith.constant 0 : index
    %0 = vector.load %arg1[%c0, %c0_0] : memref<1x112xf32, #tpu.memory_space<vmem>>, vector<1x112xf32>
    %cst = arith.constant 0.000000e+00 : f32
    %1 = vector.broadcast %cst : f32 to vector<1x112xf32>
    %2 = arith.maximumf %0, %1 : vector<1x112xf32>
    %c0_1 = arith.constant 0 : index
    %c0_2 = arith.constant 0 : index
    %3 = vector.load %arg2[%c0_1, %c0_2] : memref<112x896xf32, #tpu.memory_space<vmem>>, vector<112x896xf32>
    %cst_3 = arith.constant dense<0.000000e+00> : vector<1x896xf32>
    %4 = tpu.matmul %2, %3, %cst_3 {dimension_numbers = #tpu.dot_dimension_numbers<[1], [0], [0], [1], [0, 0, 1, 1], [], []>} : vector<1x112xf32>, vector<112x896xf32>, vector<1x896xf32> -> vector<1x896xf32>
    %c0_4 = arith.constant 0 : index
    %c0_5 = arith.constant 0 : index
    %5 = vector.load %arg3[%c0_4, %c0_5] : memref<1x896xf32, #tpu.memory_space<vmem>>, vector<1x896xf32>
    %6 = arith.addf %4, %5 : vector<1x896xf32>
    %7 = arith.negf %6 : vector<1x896xf32>
    %8 = math.exp %7 : vector<1x896xf32>
    %cst_6 = arith.constant 1.000000e+00 : f32
    %9 = vector.broadcast %cst_6 : f32 to vector<1x896xf32>
    %10 = arith.addf %9, %8 : vector<1x896xf32>
    %11 = arith.divf %9, %10 : vector<1x896xf32>
    %c0_7 = arith.constant 0 : index
    %c0_8 = arith.constant 0 : index
    %12 = vector.load %arg4[%c0_7, %c0_8] : memref<196x896xf32, #tpu.memory_space<vmem>>, vector<196x896xf32>
    %13 = vector.broadcast %11 : vector<1x896xf32> to vector<196x896xf32>
    %14 = arith.mulf %12, %13 : vector<196x896xf32>
    %c0_9 = arith.constant 0 : index
    %c0_10 = arith.constant 0 : index
    %15 = vector.load %arg5[%c0_9, %c0_10] : memref<896x128xf32, #tpu.memory_space<vmem>>, vector<896x128xf32>
    %cst_11 = arith.constant dense<0.000000e+00> : vector<196x128xf32>
    %16 = tpu.matmul %14, %15, %cst_11 {dimension_numbers = #tpu.dot_dimension_numbers<[1], [0], [0], [1], [0, 0, 1, 1], [], []>} : vector<196x896xf32>, vector<896x128xf32>, vector<196x128xf32> -> vector<196x128xf32>
    %cst_12 = arith.constant dense<0.000000e+00> : vector<128xf32>
    %17 = vector.multi_reduction <add>, %16, %cst_12 [0] : vector<196x128xf32> to vector<128xf32>
    %18 = vector.shape_cast %17 : vector<128xf32> to vector<1x128xf32>
    %19 = arith.mulf %16, %16 : vector<196x128xf32>
    %cst_13 = arith.constant dense<0.000000e+00> : vector<128xf32>
    %20 = vector.multi_reduction <add>, %19, %cst_13 [0] : vector<196x128xf32> to vector<128xf32>
    %21 = vector.shape_cast %20 : vector<128xf32> to vector<1x128xf32>
    %cst_14 = arith.constant 0.00510204071 : f32
    %22 = vector.broadcast %cst_14 : f32 to vector<1x128xf32>
    %23 = arith.mulf %18, %22 : vector<1x128xf32>
    %cst_15 = arith.constant 0.00510204071 : f32
    %24 = vector.broadcast %cst_15 : f32 to vector<1x128xf32>
    %25 = arith.mulf %21, %24 : vector<1x128xf32>
    %26 = arith.mulf %23, %23 : vector<1x128xf32>
    %27 = arith.subf %25, %26 : vector<1x128xf32>
    %cst_16 = arith.constant 0.000000e+00 : f32
    %28 = vector.broadcast %cst_16 : f32 to vector<1x128xf32>
    %29 = arith.maximumf %27, %28 : vector<1x128xf32>
    %cst_17 = arith.constant 9.99999974E-6 : f32
    %30 = vector.broadcast %cst_17 : f32 to vector<1x128xf32>
    %31 = arith.addf %29, %30 : vector<1x128xf32>
    %32 = math.rsqrt %31 : vector<1x128xf32>
    %c0_18 = arith.constant 0 : index
    %c0_19 = arith.constant 0 : index
    %33 = vector.load %arg6[%c0_18, %c0_19] : memref<1x128xf32, #tpu.memory_space<vmem>>, vector<1x128xf32>
    %34 = arith.mulf %32, %33 : vector<1x128xf32>
    %c0_20 = arith.constant 0 : index
    %c0_21 = arith.constant 0 : index
    %35 = vector.load %arg7[%c0_20, %c0_21] : memref<1x128xf32, #tpu.memory_space<vmem>>, vector<1x128xf32>
    %36 = arith.mulf %23, %34 : vector<1x128xf32>
    %37 = arith.subf %35, %36 : vector<1x128xf32>
    %38 = vector.broadcast %34 : vector<1x128xf32> to vector<196x128xf32>
    %39 = arith.mulf %16, %38 : vector<196x128xf32>
    %40 = vector.broadcast %37 : vector<1x128xf32> to vector<196x128xf32>
    %41 = arith.addf %39, %40 : vector<196x128xf32>
    %c0_22 = arith.constant 0 : index
    %c0_23 = arith.constant 0 : index
    %42 = vector.load %arg8[%c0_22, %c0_23] : memref<196x128xf32, #tpu.memory_space<vmem>>, vector<196x128xf32>
    tpu.vector_store %arg8[%c0_22, %c0_23], %41 {strides = array<i32>} : memref<196x128xf32, #tpu.memory_space<vmem>>, vector<196x128xf32>,
    return
  }
  func.func @transform_0(%arg0: i32) -> (i32, i32) {
    %c0_i32 = arith.constant 0 : i32
    %c0_i32_0 = arith.constant 0 : i32
    %c0_i32_1 = arith.constant 0 : i32
    return %c0_i32, %c0_i32_0 : i32, i32
  }
  func.func @transform_1(%arg0: i32) -> (i32, i32) {
    %c0_i32 = arith.constant 0 : i32
    %c0_i32_0 = arith.constant 0 : i32
    %c0_i32_1 = arith.constant 0 : i32
    return %c0_i32, %c0_i32_0 : i32, i32
  }
  func.func @transform_2(%arg0: i32) -> (i32, i32) {
    %c0_i32 = arith.constant 0 : i32
    %c0_i32_0 = arith.constant 0 : i32
    %c0_i32_1 = arith.constant 0 : i32
    return %c0_i32, %c0_i32_0 : i32, i32
  }
  func.func @transform_3(%arg0: i32) -> (i32, i32) {
    %c0_i32 = arith.constant 0 : i32
    %c0_i32_0 = arith.constant 0 : i32
    %c0_i32_1 = arith.constant 0 : i32
    return %c0_i32, %c0_i32_0 : i32, i32
  }
  func.func @transform_4(%arg0: i32) -> (i32, i32) {
    %c0_i32 = arith.constant 0 : i32
    %c0_i32_0 = arith.constant 0 : i32
    return %c0_i32, %arg0 : i32, i32
  }
  func.func @transform_5(%arg0: i32) -> (i32, i32) {
    %c0_i32 = arith.constant 0 : i32
    %c0_i32_0 = arith.constant 0 : i32
    return %c0_i32, %arg0 : i32, i32
  }
  func.func @transform_6(%arg0: i32) -> (i32, i32) {
    %c0_i32 = arith.constant 0 : i32
    %c0_i32_0 = arith.constant 0 : i32
    return %c0_i32, %arg0 : i32, i32
  }
  func.func @transform_7(%arg0: i32) -> (i32, i32) {
    %c0_i32 = arith.constant 0 : i32
    %c0_i32_0 = arith.constant 0 : i32
    return %c0_i32, %arg0 : i32, i32
  }
}

</mosaic_0001>

<bundles_post_ra>
// kernel: se_conv_bn.1
= control target key start
LH: loop header
LB: loop body
LE: loop exit
PB: predicated region body
PF: predicated region fallthrough
CT: control target
= control target key end

     0   :  { %s3630_s24 = smov 0   ;;  %s3632_s25 = smov 0   ;;  %s5472_s0 = inlined_call_operand.vmem [shape: f32[1,112], index: 0, kind: input, shape index: {}]   ;;  %s5473_s1 = inlined_call_operand.vmem [shape: f32[112,896], index: 1, kind: input, shape index: {}]   ;;  %s5474_s2 = inlined_call_operand.vmem [shape: f32[1,896], index: 2, kind: input, shape index: {}]   ;;  %s5475_s3 = inlined_call_operand.vmem [shape: f32[196,896], index: 3, kind: input, shape index: {}]   ;;  %s5476_s4 = inlined_call_operand.vmem [shape: f32[896,896], index: 4, kind: input, shape index: {}]   ;;  %s5477_s5 = inlined_call_operand.vmem [shape: f32[1,896], index: 5, kind: input, shape index: {}]   ;;  %s5478_s6 = inlined_call_operand.vmem [shape: f32[1,896], index: 6, kind: input, shape index: {}]   ;;  %s5479_s7 = inlined_call_operand.vmem [shape: f32[196,896], index: 7, kind: output, shape index: {}]  }
   0x1   :  { %s3634_s26 = smov 0  }
   0x2 LB: > { %s3646_s27 = sadd.s32 4294967295, %s3585_s26   ;;  %s3649_s28 = sadd.s32 1, %s3585_s26   ;;  %s3585_s26 = sphi %s3634_s26, %s5483_s26   ;;  %s3581_s25 = sphi %s3632_s25, %s5482_s25   ;;  %s3577_s24 = sphi %s3630_s24, %s5481_s24  }
   0x3   : > { %s105_s29 = ssub.s32 %s3585_s26, %s3649_s28  ;;  %s108_s30 = sadd.s32 1, %s3581_s25 }
   0x4   : > { %p106_p0 = scmp.eq.s32.totalorder %s105_s29, 0  ;;  %p115_p1 = scmp.ne.s32.totalorder %s3581_s25, %s3577_s24 }
   0x5   : > { %p116_p2 = scmp.eq.s32.totalorder %s3585_s26, 0  ;;  %p197_p3 = scmp.eq.s32.totalorder %s3646_s27, 6 }
   0x6   : > { %s3659_s8 = scalar_select %p106_p0, %s3581_s25, %s108_s30  }
   0x7   : > { %p117_p4 = por %p116_p2, %p115_p1  ;;  %p3661_p5 = por %p197_p3, %p115_p1 }
   0x8   : > { %p2894_p6 = scmp.ge.s32.totalorder %s3585_s26, 7 }
   0xa   : > { %231 = sbr.rel (%p2894_p6) target bundleno = 78 (0x4e), region = 32 }
  0x11   : > { %234 = sbr.rel (!%p117_p4) target bundleno = 78 (0x4e), region = 36  ;;  %s236_s10 = sand.u32 (%p117_p4), 1, %s3581_s25  }
  0x12   : > { %s2895_s11 = sshll.u32 (%p117_p4), %s3585_s26, 3  ;;  %s3503_s12 = smul.u32 (%p117_p4), 896, %s236_s10 }
  0x13   : > { %s3671_s15 = scalar_lea.vmem (%p117_p4), %s5476_s4, %s2895_s11 }
  0x14   : > { %v490_v0 = vld [vmem:[%s3671_s15] sm:$0xff] (%p117_p4)  ;;  %v492_v1 = vld [vmem:[%s3671_s15 + $0x38] sm:$0xff] (%p117_p4)  ;;  %v494_v2 = vld [vmem:[%s3671_s15 + $0x70] sm:$0xff] (%p117_p4)  ;;  %s3679_s16 = scalar_lea.vmem (%p117_p4), [#allocation2], %s3503_s12 }
  0x15   : > { %v496_v3 = vld [vmem:[%s3671_s15 + $0xa8] sm:$0xff] (%p117_p4)  ;;  %v498_v4 = vld [vmem:[%s3671_s15 + $0xe0] sm:$0xff] (%p117_p4)  ;;  %v500_v5 = vld [vmem:[%s3671_s15 + $0x118] sm:$0xff] (%p117_p4)  ;;  %491 = vst [vmem:[%s3679_s16] sm:$0xff] (%p117_p4), %v490_v0 }
  0x16   : > { %493 = vst [vmem:[%s3679_s16 + $0x8] sm:$0xff] (%p117_p4), %v492_v1  ;;  %495 = vst [vmem:[%s3679_s16 + $0x10] sm:$0xff] (%p117_p4), %v494_v2  ;;  %v502_v6 = vld [vmem:[%s3671_s15 + $0x150] sm:$0xff] (%p117_p4)  ;;  %v504_v7 = vld [vmem:[%s3671_s15 + $0x188] sm:$0xff] (%p117_p4) }
  0x17   : > { %497 = vst [vmem:[%s3679_s16 + $0x18] sm:$0xff] (%p117_p4), %v496_v3  ;;  %499 = vst [vmem:[%s3679_s16 + $0x20] sm:$0xff] (%p117_p4), %v498_v4  ;;  %v506_v8 = vld [vmem:[%s3671_s15 + $0x1c0] sm:$0xff] (%p117_p4)  ;;  %v508_v9 = vld [vmem:[%s3671_s15 + $0x1f8] sm:$0xff] (%p117_p4) }
  0x18   : > { %501 = vst [vmem:[%s3679_s16 + $0x28] sm:$0xff] %v500_v5  ;;  %503 = vst [vmem:[%s3679_s16 + $0x30] sm:$0xff] %v502_v6  ;;  %v510_v10 = vld [vmem:[%s3671_s15 + $0x230] sm:$0xff]  ;;  %v512_v11 = vld [vmem:[%s3671_s15 + $0x268] sm:$0xff] }
  0x19   : > { %505 = vst [vmem:[%s3679_s16 + $0x38] sm:$0xff] %v504_v7  ;;  %507 = vst [vmem:[%s3679_s16 + $0x40] sm:$0xff] %v506_v8  ;;  %v514_v12 = vld [vmem:[%s3671_s15 + $0x2a0] sm:$0xff]  ;;  %v516_v13 = vld [vmem:[%s3671_s15 + $0x2d8] sm:$0xff] }
  0x1a   : > { %509 = vst [vmem:[%s3679_s16 + $0x48] sm:$0xff] %v508_v9  ;;  %511 = vst [vmem:[%s3679_s16 + $0x50] sm:$0xff] %v510_v10  ;;  %v518_v14 = vld [vmem:[%s3671_s15 + $0x310] sm:$0xff]  ;;  %v520_v15 = vld [vmem:[%s3671_s15 + $0x348] sm:$0xff] }
  0x1b   : > { %513 = vst [vmem:[%s3679_s16 + $0x58] sm:$0xff] %v512_v11  ;;  %515 = vst [vmem:[%s3679_s16 + $0x60] sm:$0xff] %v514_v12  ;;  %v522_v16 = vld [vmem:[%s3671_s15 + $0x380] sm:$0xff]  ;;  %v524_v17 = vld [vmem:[%s3671_s15 + $0x3b8] sm:$0xff] }
  0x1c   : > { %517 = vst [vmem:[%s3679_s16 + $0x68] sm:$0xff] %v516_v13  ;;  %519 = vst [vmem:[%s3679_s16 + $0x70] sm:$0xff] %v518_v14  ;;  %v526_v18 = vld [vmem:[%s3671_s15 + $0x3f0] sm:$0xff]  ;;  %v528_v19 = vld [vmem:[%s3671_s15 + $0x428] sm:$0xff] }
  0x1d   : > { %521 = vst [vmem:[%s3679_s16 + $0x78] sm:$0xff] %v520_v15  ;;  %523 = vst [vmem:[%s3679_s16 + $0x80] sm:$0xff] %v522_v16  ;;  %v530_v20 = vld [vmem:[%s3671_s15 + $0x460] sm:$0xff]  ;;  %v532_v21 = vld [vmem:[%s3671_s15 + $0x498] sm:$0xff] }
  0x1e   : > { %525 = vst [vmem:[%s3679_s16 + $0x88] sm:$0xff] %v524_v17  ;;  %527 = vst [vmem:[%s3679_s16 + $0x90] sm:$0xff] %v526_v18  ;;  %v534_v22 = vld [vmem:[%s3671_s15 + $0x4d0] sm:$0xff]  ;;  %v536_v23 = vld [vmem:[%s3671_s15 + $0x508] sm:$0xff] }
  0x1f   : > { %529 = vst [vmem:[%s3679_s16 + $0x98] sm:$0xff] %v528_v19  ;;  %531 = vst [vmem:[%s3679_s16 + $0xa0] sm:$0xff] %v530_v20  ;;  %v538_v24 = vld [vmem:[%s3671_s15 + $0x540] sm:$0xff]  ;;  %v540_v25 = vld [vmem:[%s3671_s15 + $0x578] sm:$0xff] }
  0x20   : > { %533 = vst [vmem:[%s3679_s16 + $0xa8] sm:$0xff] %v532_v21  ;;  %535 = vst [vmem:[%s3679_s16 + $0xb0] sm:$0xff] %v534_v22  ;;  %v542_v26 = vld [vmem:[%s3671_s15 + $0x5b0] sm:$0xff]  ;;  %v544_v27 = vld [vmem:[%s3671_s15 + $0x5e8] sm:$0xff] }
  0x21   : > { %537 = vst [vmem:[%s3679_s16 + $0xb8] sm:$0xff] %v536_v23  ;;  %539 = vst [vmem:[%s3679_s16 + $0xc0] sm:$0xff] %v538_v24  ;;  %v546_v28 = vld [vmem:[%s3671_s15 + $0x620] sm:$0xff]  ;;  %v548_v29 = vld [vmem:[%s3671_s15 + $0x658] sm:$0xff] }
  0x22   : > { %541 = vst [vmem:[%s3679_s16 + $0xc8] sm:$0xff] %v540_v25  ;;  %543 = vst [vmem:[%s3679_s16 + $0xd0] sm:$0xff] %v542_v26  ;;  %v550_v30 = vld [vmem:[%s3671_s15 + $0x690] sm:$0xff]  ;;  %v552_v31 = vld [vmem:[%s3671_s15 + $0x6c8] sm:$0xff] }
  0x23   : > { %545 = vst [vmem:[%s3679_s16 + $0xd8] sm:$0xff] %v544_v27  ;;  %547 = vst [vmem:[%s3679_s16 + $0xe0] sm:$0xff] %v546_v28  ;;  %v554_v32 = vld [vmem:[%s3671_s15 + $0x700] sm:$0xff]  ;;  %v556_v33 = vld [vmem:[%s3671_s15 + $0x738] sm:$0xff] }
  0x24   : > { %549 = vst [vmem:[%s3679_s16 + $0xe8] sm:$0xff] %v548_v29  ;;  %551 = vst [vmem:[%s3679_s16 + $0xf0] sm:$0xff] %v550_v30  ;;  %v558_v34 = vld [vmem:[%s3671_s15 + $0x770] sm:$0xff]  ;;  %v560_v35 = vld [vmem:[%s3671_s15 + $0x7a8] sm:$0xff] }
  0x25   : > { %553 = vst [vmem:[%s3679_s16 + $0xf8] sm:$0xff] %v552_v31  ;;  %555 = vst [vmem:[%s3679_s16 + $0x100] sm:$0xff] %v554_v32  ;;  %v562_v36 = vld [vmem:[%s3671_s15 + $0x7e0] sm:$0xff]  ;;  %v564_v37 = vld [vmem:[%s3671_s15 + $0x818] sm:$0xff] }
  0x26   : > { %557 = vst [vmem:[%s3679_s16 + $0x108] sm:$0xff] %v556_v33  ;;  %559 = vst [vmem:[%s3679_s16 + $0x110] sm:$0xff] %v558_v34  ;;  %v566_v38 = vld [vmem:[%s3671_s15 + $0x850] sm:$0xff]  ;;  %v568_v39 = vld [vmem:[%s3671_s15 + $0x888] sm:$0xff] }
  0x27   : > { %561 = vst [vmem:[%s3679_s16 + $0x118] sm:$0xff] %v560_v35  ;;  %563 = vst [vmem:[%s3679_s16 + $0x120] sm:$0xff] %v562_v36  ;;  %v570_v40 = vld [vmem:[%s3671_s15 + $0x8c0] sm:$0xff]  ;;  %v572_v41 = vld [vmem:[%s3671_s15 + $0x8f8] sm:$0xff] }
  0x28   : > { %565 = vst [vmem:[%s3679_s16 + $0x128] sm:$0xff] %v564_v37  ;;  %567 = vst [vmem:[%s3679_s16 + $0x130] sm:$0xff] %v566_v38  ;;  %v574_v42 = vld [vmem:[%s3671_s15 + $0x930] sm:$0xff]  ;;  %v576_v43 = vld [vmem:[%s3671_s15 + $0x968] sm:$0xff] }
  0x29   : > { %569 = vst [vmem:[%s3679_s16 + $0x138] sm:$0xff] %v568_v39  ;;  %571 = vst [vmem:[%s3679_s16 + $0x140] sm:$0xff] %v570_v40  ;;  %v578_v44 = vld [vmem:[%s3671_s15 + $0x9a0] sm:$0xff]  ;;  %v580_v45 = vld [vmem:[%s3671_s15 + $0x9d8] sm:$0xff] }
  0x2a   : > { %573 = vst [vmem:[%s3679_s16 + $0x148] sm:$0xff] %v572_v41  ;;  %575 = vst [vmem:[%s3679_s16 + $0x150] sm:$0xff] %v574_v42  ;;  %v582_v46 = vld [vmem:[%s3671_s15 + $0xa10] sm:$0xff]  ;;  %v584_v47 = vld [vmem:[%s3671_s15 + $0xa48] sm:$0xff] }
  0x2b   : > { %577 = vst [vmem:[%s3679_s16 + $0x158] sm:$0xff] %v576_v43  ;;  %579 = vst [vmem:[%s3679_s16 + $0x160] sm:$0xff] %v578_v44  ;;  %v586_v48 = vld [vmem:[%s3671_s15 + $0xa80] sm:$0xff]  ;;  %v588_v49 = vld [vmem:[%s3671_s15 + $0xab8] sm:$0xff] }
  0x2c   : > { %581 = vst [vmem:[%s3679_s16 + $0x168] sm:$0xff] %v580_v45  ;;  %583 = vst [vmem:[%s3679_s16 + $0x170] sm:$0xff] %v582_v46  ;;  %v590_v50 = vld [vmem:[%s3671_s15 + $0xaf0] sm:$0xff]  ;;  %v592_v51 = vld [vmem:[%s3671_s15 + $0xb28] sm:$0xff] }
  0x2d   : > { %585 = vst [vmem:[%s3679_s16 + $0x178] sm:$0xff] %v584_v47  ;;  %587 = vst [vmem:[%s3679_s16 + $0x180] sm:$0xff] %v586_v48  ;;  %v594_v52 = vld [vmem:[%s3671_s15 + $0xb60] sm:$0xff]  ;;  %v596_v53 = vld [vmem:[%s3671_s15 + $0xb98] sm:$0xff] }
  0x2e   : > { %589 = vst [vmem:[%s3679_s16 + $0x188] sm:$0xff] %v588_v49  ;;  %591 = vst [vmem:[%s3679_s16 + $0x190] sm:$0xff] %v590_v50  ;;  %v598_v54 = vld [vmem:[%s3671_s15 + $0xbd0] sm:$0xff]  ;;  %v600_v55 = vld [vmem:[%s3671_s15 + $0xc08] sm:$0xff] }
  0x2f   : > { %593 = vst [vmem:[%s3679_s16 + $0x198] sm:$0xff] %v592_v51  ;;  %595 = vst [vmem:[%s3679_s16 + $0x1a0] sm:$0xff] %v594_v52  ;;  %v602_v56 = vld [vmem:[%s3671_s15 + $0xc40] sm:$0xff]  ;;  %v604_v57 = vld [vmem:[%s3671_s15 + $0xc78] sm:$0xff] }
  0x30   : > { %597 = vst [vmem:[%s3679_s16 + $0x1a8] sm:$0xff] %v596_v53  ;;  %599 = vst [vmem:[%s3679_s16 + $0x1b0] sm:$0xff] %v598_v54  ;;  %v606_v58 = vld [vmem:[%s3671_s15 + $0xcb0] sm:$0xff]  ;;  %v608_v59 = vld [vmem:[%s3671_s15 + $0xce8] sm:$0xff] }
  0x31   : > { %601 = vst [vmem:[%s3679_s16 + $0x1b8] sm:$0xff] %v600_v55  ;;  %603 = vst [vmem:[%s3679_s16 + $0x1c0] sm:$0xff] %v602_v56  ;;  %v610_v60 = vld [vmem:[%s3671_s15 + $0xd20] sm:$0xff]  ;;  %v612_v61 = vld [vmem:[%s3671_s15 + $0xd58] sm:$0xff] }
  0x32   : > { %605 = vst [vmem:[%s3679_s16 + $0x1c8] sm:$0xff] %v604_v57  ;;  %607 = vst [vmem:[%s3679_s16 + $0x1d0] sm:$0xff] %v606_v58  ;;  %v614_v62 = vld [vmem:[%s3671_s15 + $0xd90] sm:$0xff]  ;;  %v616_v63 = vld [vmem:[%s3671_s15 + $0xdc8] sm:$0xff] }
  0x33   : > { %609 = vst [vmem:[%s3679_s16 + $0x1d8] sm:$0xff] %v608_v59  ;;  %611 = vst [vmem:[%s3679_s16 + $0x1e0] sm:$0xff] %v610_v60  ;;  %v618_v0 = vld [vmem:[%s3671_s15 + $0xe00] sm:$0xff]  ;;  %v620_v1 = vld [vmem:[%s3671_s15 + $0xe38] sm:$0xff] }
  0x34   : > { %613 = vst [vmem:[%s3679_s16 + $0x1e8] sm:$0xff] %v612_v61  ;;  %615 = vst [vmem:[%s3679_s16 + $0x1f0] sm:$0xff] %v614_v62  ;;  %v622_v2 = vld [vmem:[%s3671_s15 + $0xe70] sm:$0xff]  ;;  %v624_v3 = vld [vmem:[%s3671_s15 + $0xea8] sm:$0xff] }
  0x35   : > { %617 = vst [vmem:[%s3679_s16 + $0x1f8] sm:$0xff] %v616_v63  ;;  %619 = vst [vmem:[%s3679_s16 + $0x200] sm:$0xff] %v618_v0  ;;  %v626_v4 = vld [vmem:[%s3671_s15 + $0xee0] sm:$0xff]  ;;  %v628_v5 = vld [vmem:[%s3671_s15 + $0xf18] sm:$0xff] }
  0x36   : > { %621 = vst [vmem:[%s3679_s16 + $0x208] sm:$0xff] %v620_v1  ;;  %623 = vst [vmem:[%s3679_s16 + $0x210] sm:$0xff] %v622_v2  ;;  %v630_v6 = vld [vmem:[%s3671_s15 + $0xf50] sm:$0xff]  ;;  %v632_v7 = vld [vmem:[%s3671_s15 + $0xf88] sm:$0xff] }
  0x37   : > { %625 = vst [vmem:[%s3679_s16 + $0x218] sm:$0xff] %v624_v3  ;;  %627 = vst [vmem:[%s3679_s16 + $0x220] sm:$0xff] %v626_v4  ;;  %v634_v8 = vld [vmem:[%s3671_s15 + $0xfc0] sm:$0xff]  ;;  %v636_v9 = vld [vmem:[%s3671_s15 + $0xff8] sm:$0xff] }
  0x38   : > { %629 = vst [vmem:[%s3679_s16 + $0x228] sm:$0xff] %v628_v5  ;;  %631 = vst [vmem:[%s3679_s16 + $0x230] sm:$0xff] %v630_v6  ;;  %v638_v10 = vld [vmem:[%s3671_s15 + $0x1030] sm:$0xff]  ;;  %v640_v11 = vld [vmem:[%s3671_s15 + $0x1068] sm:$0xff] }
  0x39   : > { %633 = vst [vmem:[%s3679_s16 + $0x238] sm:$0xff] %v632_v7  ;;  %635 = vst [vmem:[%s3679_s16 + $0x240] sm:$0xff] %v634_v8  ;;  %v642_v12 = vld [vmem:[%s3671_s15 + $0x10a0] sm:$0xff]  ;;  %v644_v13 = vld [vmem:[%s3671_s15 + $0x10d8] sm:$0xff] }
  0x3a   : > { %637 = vst [vmem:[%s3679_s16 + $0x248] sm:$0xff] %v636_v9  ;;  %639 = vst [vmem:[%s3679_s16 + $0x250] sm:$0xff] %v638_v10  ;;  %v646_v14 = vld [vmem:[%s3671_s15 + $0x1110] sm:$0xff]  ;;  %v648_v15 = vld [vmem:[%s3671_s15 + $0x1148] sm:$0xff] }
  0x3b   : > { %641 = vst [vmem:[%s3679_s16 + $0x258] sm:$0xff] %v640_v11  ;;  %643 = vst [vmem:[%s3679_s16 + $0x260] sm:$0xff] %v642_v12  ;;  %v650_v16 = vld [vmem:[%s3671_s15 + $0x1180] sm:$0xff]  ;;  %v652_v17 = vld [vmem:[%s3671_s15 + $0x11b8] sm:$0xff] }
  0x3c   : > { %645 = vst [vmem:[%s3679_s16 + $0x268] sm:$0xff] %v644_v13  ;;  %647 = vst [vmem:[%s3679_s16 + $0x270] sm:$0xff] %v646_v14  ;;  %v654_v18 = vld [vmem:[%s3671_s15 + $0x11f0] sm:$0xff]  ;;  %v656_v19 = vld [vmem:[%s3671_s15 + $0x1228] sm:$0xff] }
  0x3d   : > { %649 = vst [vmem:[%s3679_s16 + $0x278] sm:$0xff] %v648_v15  ;;  %651 = vst [vmem:[%s3679_s16 + $0x280] sm:$0xff] %v650_v16  ;;  %v658_v20 = vld [vmem:[%s3671_s15 + $0x1260] sm:$0xff]  ;;  %v660_v21 = vld [vmem:[%s3671_s15 + $0x1298] sm:$0xff] }
  0x3e   : > { %653 = vst [vmem:[%s3679_s16 + $0x288] sm:$0xff] %v652_v17  ;;  %655 = vst [vmem:[%s3679_s16 + $0x290] sm:$0xff] %v654_v18  ;;  %v662_v22 = vld [vmem:[%s3671_s15 + $0x12d0] sm:$0xff]  ;;  %v664_v23 = vld [vmem:[%s3671_s15 + $0x1308] sm:$0xff] }
  0x3f   : > { %657 = vst [vmem:[%s3679_s16 + $0x298] sm:$0xff] %v656_v19  ;;  %659 = vst [vmem:[%s3679_s16 + $0x2a0] sm:$0xff] %v658_v20  ;;  %v666_v24 = vld [vmem:[%s3671_s15 + $0x1340] sm:$0xff]  ;;  %v668_v25 = vld [vmem:[%s3671_s15 + $0x1378] sm:$0xff] }
  0x40   : > { %661 = vst [vmem:[%s3679_s16 + $0x2a8] sm:$0xff] %v660_v21  ;;  %663 = vst [vmem:[%s3679_s16 + $0x2b0] sm:$0xff] %v662_v22  ;;  %v670_v26 = vld [vmem:[%s3671_s15 + $0x13b0] sm:$0xff]  ;;  %v672_v27 = vld [vmem:[%s3671_s15 + $0x13e8] sm:$0xff] }
  0x41   : > { %665 = vst [vmem:[%s3679_s16 + $0x2b8] sm:$0xff] %v664_v23  ;;  %667 = vst [vmem:[%s3679_s16 + $0x2c0] sm:$0xff] %v666_v24  ;;  %v674_v28 = vld [vmem:[%s3671_s15 + $0x1420] sm:$0xff]  ;;  %v676_v29 = vld [vmem:[%s3671_s15 + $0x1458] sm:$0xff] }
  0x42   : > { %669 = vst [vmem:[%s3679_s16 + $0x2c8] sm:$0xff] %v668_v25  ;;  %671 = vst [vmem:[%s3679_s16 + $0x2d0] sm:$0xff] %v670_v26  ;;  %v678_v30 = vld [vmem:[%s3671_s15 + $0x1490] sm:$0xff]  ;;  %v680_v31 = vld [vmem:[%s3671_s15 + $0x14c8] sm:$0xff] }
  0x43   : > { %673 = vst [vmem:[%s3679_s16 + $0x2d8] sm:$0xff] %v672_v27  ;;  %675 = vst [vmem:[%s3679_s16 + $0x2e0] sm:$0xff] %v674_v28  ;;  %v682_v32 = vld [vmem:[%s3671_s15 + $0x1500] sm:$0xff]  ;;  %v684_v33 = vld [vmem:[%s3671_s15 + $0x1538] sm:$0xff] }
  0x44   : > { %677 = vst [vmem:[%s3679_s16 + $0x2e8] sm:$0xff] %v676_v29  ;;  %679 = vst [vmem:[%s3679_s16 + $0x2f0] sm:$0xff] %v678_v30  ;;  %v686_v34 = vld [vmem:[%s3671_s15 + $0x1570] sm:$0xff]  ;;  %v688_v35 = vld [vmem:[%s3671_s15 + $0x15a8] sm:$0xff] }
  0x45   : > { %681 = vst [vmem:[%s3679_s16 + $0x2f8] sm:$0xff] %v680_v31  ;;  %683 = vst [vmem:[%s3679_s16 + $0x300] sm:$0xff] %v682_v32  ;;  %v690_v36 = vld [vmem:[%s3671_s15 + $0x15e0] sm:$0xff]  ;;  %v692_v37 = vld [vmem:[%s3671_s15 + $0x1618] sm:$0xff] }
  0x46   : > { %685 = vst [vmem:[%s3679_s16 + $0x308] sm:$0xff] %v684_v33  ;;  %687 = vst [vmem:[%s3679_s16 + $0x310] sm:$0xff] %v686_v34  ;;  %v694_v38 = vld [vmem:[%s3671_s15 + $0x1650] sm:$0xff]  ;;  %v696_v39 = vld [vmem:[%s3671_s15 + $0x1688] sm:$0xff] }
  0x47   : > { %689 = vst [vmem:[%s3679_s16 + $0x318] sm:$0xff] %v688_v35  ;;  %691 = vst [vmem:[%s3679_s16 + $0x320] sm:$0xff] %v690_v36  ;;  %v698_v40 = vld [vmem:[%s3671_s15 + $0x16c0] sm:$0xff]  ;;  %v700_v41 = vld [vmem:[%s3671_s15 + $0x16f8] sm:$0xff] }
  0x48   : > { %693 = vst [vmem:[%s3679_s16 + $0x328] sm:$0xff] %v692_v37  ;;  %695 = vst [vmem:[%s3679_s16 + $0x330] sm:$0xff] %v694_v38  ;;  %v702_v42 = vld [vmem:[%s3671_s15 + $0x1730] sm:$0xff]  ;;  %v704_v43 = vld [vmem:[%s3671_s15 + $0x1768] sm:$0xff] }
  0x49   : > { %697 = vst [vmem:[%s3679_s16 + $0x338] sm:$0xff] %v696_v39  ;;  %699 = vst [vmem:[%s3679_s16 + $0x340] sm:$0xff] %v698_v40  ;;  %v706_v44 = vld [vmem:[%s3671_s15 + $0x17a0] sm:$0xff]  ;;  %v708_v45 = vld [vmem:[%s3671_s15 + $0x17d8] sm:$0xff] }
  0x4a   : > { %701 = vst [vmem:[%s3679_s16 + $0x348] sm:$0xff] %v700_v41  ;;  %703 = vst [vmem:[%s3679_s16 + $0x350] sm:$0xff] %v702_v42  ;;  %v710_v46 = vld [vmem:[%s3671_s15 + $0x1810] sm:$0xff]  ;;  %v712_v47 = vld [vmem:[%s3671_s15 + $0x1848] sm:$0xff] }
  0x4b   : > { %705 = vst [vmem:[%s3679_s16 + $0x358] sm:$0xff] %v704_v43  ;;  %707 = vst [vmem:[%s3679_s16 + $0x360] sm:$0xff] %v706_v44 }
  0x4c   : > { %709 = vst [vmem:[%s3679_s16 + $0x368] sm:$0xff] %v708_v45  ;;  %711 = vst [vmem:[%s3679_s16 + $0x370] sm:$0xff] %v710_v46 }
  0x4d   : > { %713 = vst [vmem:[%s3679_s16 + $0x378] sm:$0xff] %v712_v47 }
  0x4e PF: > { %p2896_p7 = scmp.ge.s32.totalorder %s3585_s26, 1  ;;  %p730_p8 = scmp.lt.s32.totalorder %s3585_s26, 8 }
  0x50   : > { %p731_p9 = pnand %p2896_p7, %p730_p8 }
  0x51   : > { %v782_v48 = vld [vmem:[%s5473_s1 + $0x8] sm:$0xff] (!%p731_p9)  ;;  %v789_v49 = vld [vmem:[%s5473_s1 + $0x40] sm:$0xff] (!%p731_p9)  ;;  %v788_v52 = vld [vmem:[%s5473_s1 + $0x38] sm:$0xff] (!%p731_p9)  ;;  %v3587_v55 = vmov (!%p731_p9), 0.0   ;;  %vm916_vm0 = vcmask (!%p731_p9), 916480   ;;  %s737_s13 = sand.u32 (!%p731_p9), 1, %s3577_s24  }
  0x52   : > { %734 = sbr.rel (%p731_p9) target bundleno = 871 (0x367), region = 82  ;;  %v781_v50 = vld [vmem:[%s5473_s1] sm:$0xff] (!%p731_p9)  ;;  %v3105_v51 = vpack.c.bf16 (!%p731_p9), %v789_v49, %v782_v48  ;;  %v796_v53 = vld [vmem:[%s5473_s1 + $0x78] sm:$0xff] (!%p731_p9)  ;;  %v803_v54 = vld [vmem:[%s5473_s1 + $0xb0] sm:$0xff] (!%p731_p9)  ;;  %984 = vmatprep.mubr.f32.mxu0 (!%p731_p9), %v3587_v55  ;;  %1055 = vmatprep.mubr.f32.mxu1 (!%p731_p9), %v3587_v55  ;;  %vm3589_vm1 = vmmov (!%p731_p9), 0   ;;  %vm2518_vm2 = vcmask (!%p731_p9), 1043456  }
  0x53   : > { %v3107_v56 = vpack.c.bf16 (!%p731_p9), %v788_v52, %v781_v50  ;;  %v3109_v57 = vpack.c.bf16 (!%p731_p9), %v803_v54, %v796_v53  ;;  %v795_v58 = vld [vmem:[%s5473_s1 + $0x70] sm:$0xff] (!%p731_p9)  ;;  %v802_v59 = vld [vmem:[%s5473_s1 + $0xa8] sm:$0xff] (!%p731_p9)  ;;  %v817_v61 = vld [vmem:[%s5473_s1 + $0x120] sm:$0xff] (!%p731_p9)  ;;  %s3504_s22 = smul.u32 (!%p731_p9), 896, %s737_s13  ;;  %p773_p10 = scmp.lt.s32.totalorder (!%p731_p9), %s3646_s27, 6 }
  0x54   : > { %v810_v60 = vld [vmem:[%s5473_s1 + $0xe8] sm:$0xff] (!%p731_p9)  ;;  %3106 = vmatprep.subr.bf16.mxu0 (!%p731_p9), %v3105_v51  ;;  %v3111_v62 = vpack.c.bf16 (!%p731_p9), %v802_v59, %v795_v58  ;;  %v809_v0 = vld [vmem:[%s5473_s1 + $0xe0] sm:$0xff] (!%p731_p9)  ;;  %v816_v1 = vld [vmem:[%s5473_s1 + $0x118] sm:$0xff] (!%p731_p9)  ;;  %s5355_s14 = smul.u32 (!%p731_p9), 200, %s737_s13 }
  0x55   : > { %3108 = vmatpush1.bf16.msra.mxu0 (!%p731_p9), %v3107_v56  ;;  %v3113_v63 = vpack.c.bf16 (!%p731_p9), %v817_v61, %v810_v60  ;;  %v824_v2 = vld [vmem:[%s5473_s1 + $0x158] sm:$0xff] (!%p731_p9)  ;;  %v831_v3 = vld [vmem:[%s5473_s1 + $0x190] sm:$0xff] (!%p731_p9)  ;;  %v3115_v4 = vpack.c.bf16 (!%p731_p9), %v816_v1, %v809_v0  ;;  %v830_v7 = vld [vmem:[%s5473_s1 + $0x188] sm:$0xff] (!%p731_p9)  ;;  %s4190_s15 = scalar_lea.vmem (!%p731_p9), [#allocation2], %s3504_s22 }
  0x56   : > { %3110 = vmatprep.subr.bf16.mxu0 (!%p731_p9), %v3109_v57  ;;  %v3117_v5 = vpack.c.bf16 (!%p731_p9), %v831_v3, %v824_v2  ;;  %v823_v6 = vld [vmem:[%s5473_s1 + $0x150] sm:$0xff] (!%p731_p9)  ;;  %v838_v8 = vld [vmem:[%s5473_s1 + $0x1c8] sm:$0xff] (!%p731_p9)  ;;  %v845_v9 = vld [vmem:[%s5473_s1 + $0x200] sm:$0xff] (!%p731_p9)  ;;  %s5377_s24 = scalar_lea.vmem (!%p731_p9), [#allocation3], %s5355_s14 }
  0x57   : > { %v3119_v10 = vpack.c.bf16 (!%p731_p9), %v830_v7, %v823_v6  ;;  %v3121_v11 = vpack.c.bf16 (!%p731_p9), %v845_v9, %v838_v8  ;;  %v837_v12 = vld [vmem:[%s5473_s1 + $0x1c0] sm:$0xff] (!%p731_p9)  ;;  %v844_v13 = vld [vmem:[%s5473_s1 + $0x1f8] sm:$0xff] (!%p731_p9)  ;;  %v859_v15 = vld [vmem:[%s5473_s1 + $0x270] sm:$0xff] (!%p731_p9) }
  0x58   : > { %v852_v14 = vld [vmem:[%s5473_s1 + $0x238] sm:$0xff] (!%p731_p9)  ;;  %v3123_v16 = vpack.c.bf16 (!%p731_p9), %v844_v13, %v837_v12  ;;  %v851_v18 = vld [vmem:[%s5473_s1 + $0x230] sm:$0xff] (!%p731_p9)  ;;  %v858_v19 = vld [vmem:[%s5473_s1 + $0x268] sm:$0xff] (!%p731_p9) }
  0x59   : > { %3112 = vmatpush1.bf16.msra.mxu0 %v3111_v62  ;;  %v3125_v17 = vpack.c.bf16 %v859_v15, %v852_v14  ;;  %v866_v20 = vld [vmem:[%s5473_s1 + $0x2a8] sm:$0xff]  ;;  %v873_v21 = vld [vmem:[%s5473_s1 + $0x2e0] sm:$0xff]  ;;  %v872_v23 = vld [vmem:[%s5473_s1 + $0x2d8] sm:$0xff]  ;;  %v3127_v27 = vpack.c.bf16 %v858_v19, %v851_v18  ;;  %s774_s29 = scalar_select %p773_p10, %s3646_s27, 6 }
  0x5a   : > { %3114 = vmatprep.subr.bf16.mxu0 %v3113_v63  ;;  %v865_v22 = vld [vmem:[%s5473_s1 + $0x2a0] sm:$0xff]  ;;  %v784_v24 = vld [vmem:[%s5473_s1 + $0x18] sm:$0xff]  ;;  %v791_v25 = vld [vmem:[%s5473_s1 + $0x50] sm:$0xff]  ;;  %v3129_v32 = vpack.c.bf16 %v873_v21, %v866_v20  ;;  %s2908_s13 = sshll.u32 (%p3661_p5), %s3646_s27, 3 }
  0x5b   : > { %v783_v26 = vld [vmem:[%s5473_s1 + $0x10] sm:$0xff]  ;;  %v3133_v28 = vpack.c.bf16 %v791_v25, %v784_v24  ;;  %v790_v29 = vld [vmem:[%s5473_s1 + $0x48] sm:$0xff]  ;;  %v805_v31 = vld [vmem:[%s5473_s1 + $0xc0] sm:$0xff]  ;;  %v3131_v42 = vpack.c.bf16 %v872_v23, %v865_v22  ;;  %s775_s30 = scalar_lea.vmem %s5477_s5, %s774_s29  ;;  %s778_s12 = scalar_lea.vmem %s5478_s6, %s774_s29 }
  0x5c   : > { %v798_v30 = vld [vmem:[%s5473_s1 + $0x88] sm:$0xff]  ;;  %v3135_v33 = vpack.c.bf16 %v790_v29, %v783_v26  ;;  %v797_v35 = vld [vmem:[%s5473_s1 + $0x80] sm:$0xff]  ;;  %v804_v36 = vld [vmem:[%s5473_s1 + $0xb8] sm:$0xff]  ;;  %s5413_s18 = scalar_lea.vmem (%p3661_p5), %s5479_s7, %s2908_s13 }
  0x5d   : > { %3116 = vmatpush1.bf16.msra.mxu0 %v3115_v4  ;;  %v3137_v34 = vpack.c.bf16 %v805_v31, %v798_v30  ;;  %v812_v37 = vld [vmem:[%s5473_s1 + $0xf8] sm:$0xff]  ;;  %v786_v38 = vld [vmem:[%s5473_s1 + $0x28] sm:$0xff]  ;;  %v793_v39 = vld [vmem:[%s5473_s1 + $0x60] sm:$0xff]  ;;  %3134 = vmatprep.subr.bf16.mxu1 %v3133_v28  ;;  %v3139_v41 = vpack.c.bf16 %v804_v36, %v797_v35 }
  0x5e   : > { %3118 = vmatprep.subr.bf16.mxu0 %v3117_v5  ;;  %v819_v40 = vld [vmem:[%s5473_s1 + $0x130] sm:$0xff]  ;;  %3136 = vmatpush1.bf16.msra.mxu1 %v3135_v33  ;;  %v779_v43 = vld [vmem:[%s5472_s0] sm:$0x1]  ;;  %v818_v46 = vld [vmem:[%s5473_s1 + $0x128] sm:$0xff]  ;;  %v3161_v47 = vpack.c.bf16 %v793_v39, %v786_v38 }
  0x5f   : > { %3138 = vmatprep.subr.bf16.mxu1 %v3137_v34  ;;  %v3141_v44 = vpack.c.bf16 %v819_v40, %v812_v37  ;;  %v811_v45 = vld [vmem:[%s5473_s1 + $0xf0] sm:$0xff]  ;;  %v785_v48 = vld [vmem:[%s5473_s1 + $0x20] sm:$0xff]  ;;  %v792_v49 = vld [vmem:[%s5473_s1 + $0x58] sm:$0xff]  ;;  %v4050_v54 = vmax.f32 %v779_v43, 0.0 }
  0x60   : > { %v800_v50 = vld [vmem:[%s5473_s1 + $0x98] sm:$0xff]  ;;  %v807_v51 = vld [vmem:[%s5473_s1 + $0xd0] sm:$0xff]  ;;  %v826_v52 = vld [vmem:[%s5473_s1 + $0x168] sm:$0xff]  ;;  %v3143_v56 = vpack.c.bf16 %v818_v46, %v811_v45  ;;  %v3163_v57 = vpack.c.bf16 %v792_v49, %v785_v48  ;;  %v3588_v49 = vmov 0.0|0.0  }
  0x61   : > { %3120 = vmatpush1.bf16.msra.mxu0 %v3119_v10  ;;  %v833_v53 = vld [vmem:[%s5473_s1 + $0x1a0] sm:$0xff]  ;;  %v799_v58 = vld [vmem:[%s5473_s1 + $0x90] sm:$0xff]  ;;  %v832_v60 = vld [vmem:[%s5473_s1 + $0x198] sm:$0xff]  ;;  %v3165_v61 = vpack.c.bf16 %v807_v51, %v800_v50 }
  0x62   : > { %3122 = vmatprep.subr.bf16.mxu0 %v3121_v11  ;;  %3140 = vmatpush1.bf16.msra.mxu1 %v3139_v41  ;;  %v825_v59 = vld [vmem:[%s5473_s1 + $0x160] sm:$0xff]  ;;  %v806_v62 = vld [vmem:[%s5473_s1 + $0xc8] sm:$0xff]  ;;  %v3145_v63 = vpack.c.bf16 %v833_v53, %v826_v52  ;;  %v840_v0 = vld [vmem:[%s5473_s1 + $0x1d8] sm:$0xff] }
  0x63   : > { %3142 = vmatprep.subr.bf16.mxu1 %v3141_v44  ;;  %v847_v1 = vld [vmem:[%s5473_s1 + $0x210] sm:$0xff]  ;;  %v814_v2 = vld [vmem:[%s5473_s1 + $0x108] sm:$0xff]  ;;  %v821_v3 = vld [vmem:[%s5473_s1 + $0x140] sm:$0xff]  ;;  %v3147_v4 = vpack.c.bf16 %v832_v60, %v825_v59  ;;  %v3167_v5 = vpack.c.bf16 %v806_v62, %v799_v58 }
  0x64   : > { %v813_v6 = vld [vmem:[%s5473_s1 + $0x100] sm:$0xff]  ;;  %v3149_v7 = vpack.c.bf16 %v847_v1, %v840_v0  ;;  %v839_v8 = vld [vmem:[%s5473_s1 + $0x1d0] sm:$0xff]  ;;  %v846_v9 = vld [vmem:[%s5473_s1 + $0x208] sm:$0xff]  ;;  %v3169_v10 = vpack.c.bf16 %v821_v3, %v814_v2 }
  0x65   : > { %3124 = vmatpush1.bf16.msra.mxu0 %v3123_v16  ;;  %v820_v11 = vld [vmem:[%s5473_s1 + $0x138] sm:$0xff]  ;;  %v854_v12 = vld [vmem:[%s5473_s1 + $0x248] sm:$0xff]  ;;  %v861_v13 = vld [vmem:[%s5473_s1 + $0x280] sm:$0xff]  ;;  %v3151_v16 = vpack.c.bf16 %v846_v9, %v839_v8 }
  0x66   : > { %3126 = vmatprep.subr.bf16.mxu0 %v3125_v17  ;;  %3144 = vmatpush1.bf16.msra.mxu1 %v3143_v56  ;;  %v828_v14 = vld [vmem:[%s5473_s1 + $0x178] sm:$0xff]  ;;  %v835_v15 = vld [vmem:[%s5473_s1 + $0x1b0] sm:$0xff]  ;;  %v3171_v17 = vpack.c.bf16 %v820_v11, %v813_v6  ;;  %v3153_v19 = vpack.c.bf16 %v861_v13, %v854_v12  ;;  %v853_v20 = vld [vmem:[%s5473_s1 + $0x240] sm:$0xff] }
  0x67   : > { %3146 = vmatprep.subr.bf16.mxu1 %v3145_v63  ;;  %v827_v18 = vld [vmem:[%s5473_s1 + $0x170] sm:$0xff]  ;;  %v860_v21 = vld [vmem:[%s5473_s1 + $0x278] sm:$0xff]  ;;  %v3173_v22 = vpack.c.bf16 %v835_v15, %v828_v14  ;;  %v834_v23 = vld [vmem:[%s5473_s1 + $0x1a8] sm:$0xff] }
  0x68   : > { %v868_v24 = vld [vmem:[%s5473_s1 + $0x2b8] sm:$0xff]  ;;  %v875_v25 = vld [vmem:[%s5473_s1 + $0x2f0] sm:$0xff]  ;;  %v842_v26 = vld [vmem:[%s5473_s1 + $0x1e8] sm:$0xff]  ;;  %v3155_v28 = vpack.c.bf16 %v860_v21, %v853_v20  ;;  %v3175_v29 = vpack.c.bf16 %v834_v23, %v827_v18 }
  0x69   : > { %3128 = vmatpush1.bf16.msra.mxu0 %v3127_v27  ;;  %v849_v27 = vld [vmem:[%s5473_s1 + $0x220] sm:$0xff]  ;;  %v3157_v30 = vpack.c.bf16 %v875_v25, %v868_v24  ;;  %v867_v31 = vld [vmem:[%s5473_s1 + $0x2b0] sm:$0xff]  ;;  %v848_v35 = vld [vmem:[%s5473_s1 + $0x218] sm:$0xff] }
  0x6a   : > { %3130 = vmatprep.subr.bf16.mxu0 %v3129_v32  ;;  %3148 = vmatpush1.bf16.msra.mxu1 %v3147_v4  ;;  %v874_v32 = vld [vmem:[%s5473_s1 + $0x2e8] sm:$0xff]  ;;  %v3177_v33 = vpack.c.bf16 %v849_v27, %v842_v26  ;;  %v841_v34 = vld [vmem:[%s5473_s1 + $0x1e0] sm:$0xff]  ;;  %v856_v36 = vld [vmem:[%s5473_s1 + $0x258] sm:$0xff] }
  0x6b   : > { %3150 = vmatprep.subr.bf16.mxu1 %v3149_v7  ;;  %v863_v37 = vld [vmem:[%s5473_s1 + $0x290] sm:$0xff]  ;;  %v3159_v38 = vpack.c.bf16 %v874_v32, %v867_v31  ;;  %v3179_v39 = vpack.c.bf16 %v848_v35, %v841_v34  ;;  %v794_v41 = vld [vmem:[%s5473_s1 + $0x68] sm:$0xff]  ;;  %v877_v46 = vld [vmem:[%s5473_s1 + $0x300] sm:$0xff] }
  0x6c   : > { %v787_v40 = vld [vmem:[%s5473_s1 + $0x30] sm:$0xff]  ;;  %v862_v44 = vld [vmem:[%s5473_s1 + $0x288] sm:$0xff]  ;;  %v801_v50 = vld [vmem:[%s5473_s1 + $0xa0] sm:$0xff] }
  0x6d   : > { %3132 = vmatpush1.bf16.msra.mxu0 %v3131_v42  ;;  %v3181_v42 = vpack.c.bf16 %v863_v37, %v856_v36  ;;  %v855_v43 = vld [vmem:[%s5473_s1 + $0x250] sm:$0xff]  ;;  %v870_v45 = vld [vmem:[%s5473_s1 + $0x2c8] sm:$0xff]  ;;  %v808_v51 = vld [vmem:[%s5473_s1 + $0xd8] sm:$0xff] }
  0x6e   : > { %3162 = vmatprep.subr.bf16.mxu0 %v3161_v47  ;;  %3152 = vmatpush1.bf16.msra.mxu1 %v3151_v16  ;;  %v3190_v47 = vpack.c.bf16 %v794_v41, %v787_v40  ;;  %v3183_v48 = vpack.c.bf16 %v862_v44, %v855_v43  ;;  %v3185_v52 = vpack.c.bf16 %v877_v46, %v870_v45  ;;  %v869_v53 = vld [vmem:[%s5473_s1 + $0x2c0] sm:$0xff]  ;;  %v876_v56 = vld [vmem:[%s5473_s1 + $0x2f8] sm:$0xff]  ;;  %v815_v59 = vld [vmem:[%s5473_s1 + $0x110] sm:$0xff] }
  0x6f   : > { %3154 = vmatprep.subr.bf16.mxu1 %v3153_v19  ;;  %v3187_v58 = vpack.c.bf16 %v876_v56, %v869_v53  ;;  %v822_v60 = vld [vmem:[%s5473_s1 + $0x148] sm:$0xff]  ;;  %v829_v0 = vld [vmem:[%s5473_s1 + $0x180] sm:$0xff]  ;;  %v836_v1 = vld [vmem:[%s5473_s1 + $0x1b8] sm:$0xff] }
  0x70   : > { %2897 = vmatmul.mubr.msk.f32.vlgmr.msra.gmra.mrb[0].mxu0 %vm916_vm0, %v4050_v54  ;;  %v1688_v62 = vld [vmem:[%s4190_s15 + $0x208] sm:$0xff]  ;;  %v3196_v63 = vpack.c.bf16 %v822_v60, %v815_v59  ;;  %v3199_v3 = vpack.c.bf16 %v836_v1, %v829_v0  ;;  %v843_v4 = vld [vmem:[%s5473_s1 + $0x1f0] sm:$0xff]  ;;  %v857_v7 = vld [vmem:[%s5473_s1 + $0x260] sm:$0xff] }
  0x71   : > { %3164 = vmatpush1.bf16.msra.mxu0 %v3163_v57  ;;  %1126 = vmatprep.mubr.f32.mxu0 %v3587_v55  ;;  %v3193_v57 = vpack.c.bf16 %v808_v51, %v801_v50  ;;  %v864_v8 = vld [vmem:[%s5473_s1 + $0x298] sm:$0xff]  ;;  %v878_v11 = vld [vmem:[%s5473_s1 + $0x308] sm:$0xff]  ;;  %v1623_v13 = vld [vmem:[%s4190_s15] sm:$0xff] }
  0x72   : > { %3166 = vmatprep.subr.bf16.mxu0 %v3165_v61  ;;  %3156 = vmatpush1.bf16.msra.mxu1 %v3155_v28  ;;  %v1687_v61 = vld [vmem:[%s4190_s15 + $0x200] sm:$0xff]  ;;  %v3205_v9 = vpack.c.bf16 %v864_v8, %v857_v7  ;;  %v1624_v14 = vld [vmem:[%s4190_s15 + $0x8] sm:$0xff]  ;;  %v1625_v16 = vld [vmem:[%s4190_s15 + $0x10] sm:$0xff] }
  0x73   : > { %3158 = vmatprep.subr.bf16.mxu1 %v3157_v30  ;;  %v3307_v2 = vpack.c.bf16 %v1688_v62, %v1687_v61  ;;  %v3211_v15 = vpack.c.bf16 %v1624_v14, %v1623_v13  ;;  %v1627_v19 = vld [vmem:[%s4190_s15 + $0x20] sm:$0xff]  ;;  %v1628_v20 = vld [vmem:[%s4190_s15 + $0x28] sm:$0xff]  ;;  %v1630_v23 = vld [vmem:[%s4190_s15 + $0x38] sm:$0xff] }
  0x74   : > { %v3217_v21 = vpack.c.bf16 %v1628_v20, %v1627_v19  ;;  %v1632_v25 = vld [vmem:[%s4190_s15 + $0x48] sm:$0xff]  ;;  %v1633_v27 = vld [vmem:[%s4190_s15 + $0x50] sm:$0xff]  ;;  %v1634_v28 = vld [vmem:[%s4190_s15 + $0x58] sm:$0xff] }
  0x75   : > { %3168 = vmatpush1.bf16.msra.mxu0 %v3167_v5  ;;  %v850_v5 = vld [vmem:[%s5473_s1 + $0x228] sm:$0xff]  ;;  %v1635_v30 = vld [vmem:[%s4190_s15 + $0x60] sm:$0xff]  ;;  %v1638_v34 = vld [vmem:[%s4190_s15 + $0x78] sm:$0xff] }
  0x76   : > { %3170 = vmatprep.subr.bf16.mxu0 %v3169_v10  ;;  %3160 = vmatpush1.bf16.msra.mxu1 %v3159_v38  ;;  %v3202_v6 = vpack.c.bf16 %v850_v5, %v843_v4  ;;  %v871_v10 = vld [vmem:[%s5473_s1 + $0x2d0] sm:$0xff]  ;;  %v1636_v31 = vld [vmem:[%s4190_s15 + $0x68] sm:$0xff]  ;;  %v1690_v37 = vld [vmem:[%s4190_s15 + $0x218] sm:$0xff] }
  0x77   : > { %3189 = vmatprep.subr.bf16.mxu1 %v3588_v49  ;;  %v3208_v12 = vpack.c.bf16 %v878_v11, %v871_v10  ;;  %v3229_v32 = vpack.c.bf16 %v1636_v31, %v1635_v30  ;;  %v1689_v36 = vld [vmem:[%s4190_s15 + $0x210] sm:$0xff]  ;;  %v1639_v38 = vld [vmem:[%s4190_s15 + $0x80] sm:$0xff]  ;;  %v1640_v40 = vld [vmem:[%s4190_s15 + $0x88] sm:$0xff] }
  0x78   : > { %v3235_v41 = vpack.c.bf16 %v1640_v40, %v1639_v38  ;;  %v1692_v43 = vld [vmem:[%s4190_s15 + $0x228] sm:$0xff]  ;;  %v1641_v44 = vld [vmem:[%s4190_s15 + $0x90] sm:$0xff]  ;;  %v1642_v46 = vld [vmem:[%s4190_s15 + $0x98] sm:$0xff] }
  0x79   : > { %3172 = vmatpush1.bf16.msra.mxu0 %v3171_v17  ;;  %2898 = vmatmul.mubr.msk.f32.vlgmr.msra.gmra.mrb[0].mxu1 %vm916_vm0, %v4050_v54  ;;  %v1626_v17 = vld [vmem:[%s4190_s15 + $0x18] sm:$0xff]  ;;  %v1643_v51 = vld [vmem:[%s4190_s15 + $0xa0] sm:$0xff]  ;;  %v1644_v53 = vld [vmem:[%s4190_s15 + $0xa8] sm:$0xff] }
  0x7a   : > { %3174 = vmatprep.subr.bf16.mxu0 %v3173_v22  ;;  %3191 = vmatpush3.bf16.msra.mxu1 %v3190_v47  ;;  %v3214_v18 = vpack.c.bf16 %v1626_v17, %v1625_v16  ;;  %v1629_v22 = vld [vmem:[%s4190_s15 + $0x30] sm:$0xff]  ;;  %v3238_v47 = vpack.c.bf16 %v1642_v46, %v1641_v44  ;;  %v1694_v50 = vld [vmem:[%s4190_s15 + $0x238] sm:$0xff]  ;;  %v3241_v56 = vpack.c.bf16 %v1644_v53, %v1643_v51  ;;  %v1647_v1 = vld [vmem:[%s4190_s15 + $0xc0] sm:$0xff] }
  0x7b   : > { %2995 = vmatprep.mubr.msk.f32.mxu1 %vm3589_vm1, %v3587_v55  ;;  %3192 = vmatprep.subr.bf16.mxu1 %v3588_v49  ;;  %v3220_v24 = vpack.c.bf16 %v1630_v23, %v1629_v22  ;;  %v1645_v59 = vld [vmem:[%s4190_s15 + $0xb0] sm:$0xff]  ;;  %v1646_v61 = vld [vmem:[%s4190_s15 + $0xb8] sm:$0xff]  ;;  %v1699_v5 = vld [vmem:[%s4190_s15 + $0x260] sm:$0xff] }
  0x7c   : > { %v3244_v62 = vpack.c.bf16 %v1646_v61, %v1645_v59  ;;  %v1698_v0 = vld [vmem:[%s4190_s15 + $0x258] sm:$0xff]  ;;  %v1649_v7 = vld [vmem:[%s4190_s15 + $0xd0] sm:$0xff]  ;;  %v1651_v13 = vld [vmem:[%s4190_s15 + $0xe0] sm:$0xff] }
  0x7d   : > { %3176 = vmatpush1.bf16.msra.mxu0 %v3175_v29  ;;  %v3226_v29 = vpack.c.bf16 %v1634_v28, %v1633_v27  ;;  %v1701_v11 = vld [vmem:[%s4190_s15 + $0x270] sm:$0xff]  ;;  %v1703_v17 = vld [vmem:[%s4190_s15 + $0x280] sm:$0xff]  ;;  %v1716_v38 = vld [vmem:[%s4190_s15 + $0x2e8] sm:$0xff] }
  0x7e   : > { %3178 = vmatprep.subr.bf16.mxu0 %v3177_v33  ;;  %3194 = vmatpush3.bf16.msra.mxu1 %v3193_v57  ;;  %v1637_v33 = vld [vmem:[%s4190_s15 + $0x70] sm:$0xff]  ;;  %v1695_v57 = vld [vmem:[%s4190_s15 + $0x240] sm:$0xff] }
  0x7f   : > { %3195 = vmatprep.subr.bf16.mxu1 %v3588_v49  ;;  %v3232_v35 = vpack.c.bf16 %v1638_v34, %v1637_v33  ;;  %v1653_v19 = vld [vmem:[%s4190_s15 + $0xf0] sm:$0xff]  ;;  %v1711_v31 = vld [vmem:[%s4190_s15 + $0x2c0] sm:$0xff] }
  0x80   : > { %v1705_v23 = vld [vmem:[%s4190_s15 + $0x290] sm:$0xff]  ;;  %v4331_v46 = vld [vmem:[%s5474_s2] sm:$0xff] }
  0x81   : > { %3180 = vmatpush1.bf16.msra.mxu0 %v3179_v39  ;;  %v3310_v39 = vpack.c.bf16 %v1690_v37, %v1689_v36  ;;  %v1709_v28 = vld [vmem:[%s4190_s15 + $0x2b0] sm:$0xff]  ;;  %v1715_v37 = vld [vmem:[%s4190_s15 + $0x2e0] sm:$0xff] }
  0x82   : > { %3182 = vmatprep.subr.bf16.mxu0 %v3181_v42  ;;  %3197 = vmatpush3.bf16.msra.mxu1 %v3196_v63  ;;  %v1691_v42 = vld [vmem:[%s4190_s15 + $0x220] sm:$0xff]  ;;  %v1697_v63 = vld [vmem:[%s4190_s15 + $0x250] sm:$0xff] }
  0x83   : > { %3198 = vmatprep.subr.bf16.mxu1 %v3588_v49  ;;  %v3313_v45 = vpack.c.bf16 %v1692_v43, %v1691_v42  ;;  %v1713_v34 = vld [vmem:[%s4190_s15 + $0x2d0] sm:$0xff]  ;;  %v881_v43 = vlaneseq }
  0x84   : > { %v1717_v40 = vld [vmem:[%s4190_s15 + $0x2f0] sm:$0xff] }
  0x85   : > { %3184 = vmatpush1.bf16.msra.mxu0 %v3183_v48  ;;  %v1693_v48 = vld [vmem:[%s4190_s15 + $0x230] sm:$0xff]  ;;  %v4323_v44 = vshrl.u32 %v881_v43, 7 }
  0x86   : > { %3186 = vmatprep.subr.bf16.mxu0 %v3185_v52  ;;  %3200 = vmatpush3.bf16.msra.mxu1 %v3199_v3  ;;  %v3316_v52 = vpack.c.bf16 %v1694_v50, %v1693_v48  ;;  %v1648_v3 = vld [vmem:[%s4190_s15 + $0xc8] sm:$0xff] }
  0x87   : > { %3201 = vmatprep.subr.bf16.mxu1 %v3588_v49  ;;  %v3247_v4 = vpack.c.bf16 %v1648_v3, %v1647_v1  ;;  %v899_v1 = vsub.s32 4, %v4323_v44 }
  0x89   : > { %3188 = vmatpush1.bf16.msra.mxu0 %v3187_v58  ;;  %v1696_v58 = vld [vmem:[%s4190_s15 + $0x248] sm:$0xff]  ;;  %v900_v3 = vrot.slane %v4331_v46, %v899_v1  ;;  %v1666_v1 = vld [vmem:[%s4190_s15 + $0x158] sm:$0xff] }
  0x8a   : > { %3306 = vmatprep.subr.bf16.mxu0 %v3588_v49  ;;  %3203 = vmatpush3.bf16.msra.mxu1 %v3202_v6  ;;  %v3319_v60 = vpack.c.bf16 %v1696_v58, %v1695_v57  ;;  %v1700_v6 = vld [vmem:[%s4190_s15 + $0x268] sm:$0xff] }
  0x8b   : > { %3204 = vmatprep.subr.bf16.mxu1 %v3588_v49  ;;  %v3325_v8 = vpack.c.bf16 %v1700_v6, %v1699_v5 }
  0x8c   : > { %2899 = vmatmul.mubr.msk.f32.vlgmr.msra.gmra.mrb[2].mxu0 %vm916_vm0, %v4050_v54 }
  0x8d   : > { %3308 = vmatpush1.bf16.msra.mxu0 %v3307_v2  ;;  %v3322_v2 = vpack.c.bf16 %v1698_v0, %v1697_v63 }
  0x8e   : > { %3309 = vmatprep.subr.bf16.mxu0 %v3588_v49  ;;  %3206 = vmatpush3.bf16.msra.mxu1 %v3205_v9  ;;  %v1650_v9 = vld [vmem:[%s4190_s15 + $0xd8] sm:$0xff] }
  0x8f   : > { %3207 = vmatprep.subr.bf16.mxu1 %v3588_v49  ;;  %v3250_v10 = vpack.c.bf16 %v1650_v9, %v1649_v7  ;;  %v1245_v7 = vld [vmem:[%s5475_s3] sm:$0xff] }
  0x91   : > { %3311 = vmatpush1.bf16.msra.mxu0 %v3310_v39  ;;  %v3349_v39 = vpack.c.bf16 %v1716_v38, %v1715_v37  ;;  %v1662_v37 = vld [vmem:[%s4190_s15 + $0x138] sm:$0xff] }
  0x92   : > { %3209 = vmatpush3.bf16.msra.mxu1 %v3208_v12  ;;  %3312 = vmatprep.subr.bf16.mxu0 %v3588_v49  ;;  %v1702_v12 = vld [vmem:[%s4190_s15 + $0x278] sm:$0xff] }
  0x93   : > { %3210 = vmatprep.subr.bf16.mxu1 %v3588_v49  ;;  %v3328_v14 = vpack.c.bf16 %v1702_v12, %v1701_v11  ;;  %v1246_v12 = vld [vmem:[%s5475_s3 + $0x8] sm:$0xff] }
  0x95   : > { %2996 = vmatmul.mubr.msk.f32.vlgmr.msra.gmra.mrb[2].mxu1 %vm916_vm0, %v4050_v54  ;;  %v1631_v54 = vld [vmem:[%s4190_s15 + $0x40] sm:$0xff]  ;;  %3314 = vmatpush1.bf16.msra.mxu0 %v3313_v45  ;;  %v4326_v45 = vsub.s32 0, %v4323_v44 }
  0x96   : > { %3212 = vmatpush1.bf16.msra.mxu1 %v3211_v15  ;;  %v3223_v26 = vpack.c.bf16 %v1632_v25, %v1631_v54  ;;  %3315 = vmatprep.subr.bf16.mxu0 %v3588_v49  ;;  %v1652_v15 = vld [vmem:[%s4190_s15 + $0xe8] sm:$0xff]  ;;  %v1707_v25 = vld [vmem:[%s4190_s15 + $0x2a0] sm:$0xff] }
  0x97   : > { %3213 = vmatprep.subr.bf16.mxu1 %v3588_v49  ;;  %v3253_v16 = vpack.c.bf16 %v1652_v15, %v1651_v13  ;;  %v884_v48 = vrot.slane %v4331_v46, %v4326_v45  ;;  %v1655_v13 = vld [vmem:[%s4190_s15 + $0x100] sm:$0xff] }
  0x99   : > { %3317 = vmatpush1.bf16.msra.mxu0 %v3316_v52 }
  0x9a   : > { %3215 = vmatpush1.bf16.msra.mxu1 %v3214_v18  ;;  %3318 = vmatprep.subr.bf16.mxu0 %v3588_v49  ;;  %v1704_v18 = vld [vmem:[%s4190_s15 + $0x288] sm:$0xff] }
  0x9b   : > { %3216 = vmatprep.subr.bf16.mxu1 %v3588_v49  ;;  %v3331_v20 = vpack.c.bf16 %v1704_v18, %v1703_v17 }
  0x9d   : > { %3320 = vmatpush1.bf16.msra.mxu0 %v3319_v60 }
  0x9e   : > { %3218 = vmatpush1.bf16.msra.mxu1 %v3217_v21  ;;  %3321 = vmatprep.subr.bf16.mxu0 %v3588_v49  ;;  %v1654_v21 = vld [vmem:[%s4190_s15 + $0xf8] sm:$0xff] }
  0x9f   : > { %3219 = vmatprep.subr.bf16.mxu1 %v3588_v49  ;;  %v3256_v22 = vpack.c.bf16 %v1654_v21, %v1653_v19  ;;  %v1253_v19 = vld [vmem:[%s5475_s3 + $0x40] sm:$0xff] }
  0xa1   : > { %3323 = vmatpush1.bf16.msra.mxu0 %v3322_v2  ;;  %v903_v2 = vsub.s32 5, %v4323_v44 }
  0xa2   : > { %3221 = vmatpush1.bf16.msra.mxu1 %v3220_v24  ;;  %3324 = vmatprep.subr.bf16.mxu0 %v3588_v49  ;;  %v1706_v24 = vld [vmem:[%s4190_s15 + $0x298] sm:$0xff] }
  0xa3   : > { %3222 = vmatprep.subr.bf16.mxu1 %v3588_v49  ;;  %v3334_v54 = vpack.c.bf16 %v1706_v24, %v1705_v23  ;;  %v1657_v23 = vld [vmem:[%s4190_s15 + $0x110] sm:$0xff]  ;;  %v1658_v24 = vld [vmem:[%s4190_s15 + $0x118] sm:$0xff] }
  0xa5   : > { %3326 = vmatpush1.bf16.msra.mxu0 %v3325_v8 }
  0xa6   : > { %3224 = vmatpush1.bf16.msra.mxu1 %v3223_v26  ;;  %3327 = vmatprep.subr.bf16.mxu0 %v3588_v49  ;;  %v1708_v26 = vld [vmem:[%s4190_s15 + $0x2a8] sm:$0xff] }
  0xa7   : > { %3225 = vmatprep.subr.bf16.mxu1 %v3588_v49  ;;  %v3337_v27 = vpack.c.bf16 %v1708_v26, %v1707_v25  ;;  %v1252_v25 = vld [vmem:[%s5475_s3 + $0x38] sm:$0xff] }
  0xa8   : > { %v1260_v26 = vld [vmem:[%s5475_s3 + $0x78] sm:$0xff] }
  0xa9   : > { %3329 = vmatpush1.bf16.msra.mxu0 %v3328_v14  ;;  %v1656_v14 = vld [vmem:[%s4190_s15 + $0x108] sm:$0xff] }
  0xaa   : > { %3227 = vmatpush1.bf16.msra.mxu1 %v3226_v29  ;;  %3330 = vmatprep.subr.bf16.mxu0 %v3588_v49  ;;  %v1710_v29 = vld [vmem:[%s4190_s15 + $0x2b8] sm:$0xff] }
  0xab   : > { %3228 = vmatprep.subr.bf16.mxu1 %v3588_v49  ;;  %v3340_v30 = vpack.c.bf16 %v1710_v29, %v1709_v28  ;;  %v1659_v29 = vld [vmem:[%s4190_s15 + $0x120] sm:$0xff] }
  0xad   : > { %3332 = vmatpush1.bf16.msra.mxu0 %v3331_v20 }
  0xae   : > { %3230 = vmatpush1.bf16.msra.mxu1 %v3229_v32  ;;  %3333 = vmatprep.subr.bf16.mxu0 %v3588_v49  ;;  %v1712_v32 = vld [vmem:[%s4190_s15 + $0x2c8] sm:$0xff] }
  0xaf   : > { %3231 = vmatprep.subr.bf16.mxu1 %v3588_v49  ;;  %v3343_v33 = vpack.c.bf16 %v1712_v32, %v1711_v31  ;;  %v1259_v32 = vld [vmem:[%s5475_s3 + $0x70] sm:$0xff] }
  0xb1   : > { %3335 = vmatpush1.bf16.msra.mxu0 %v3334_v54 }
  0xb2   : > { %3233 = vmatpush1.bf16.msra.mxu1 %v3232_v35  ;;  %3336 = vmatprep.subr.bf16.mxu0 %v3588_v49  ;;  %v1714_v35 = vld [vmem:[%s4190_s15 + $0x2d8] sm:$0xff] }
  0xb3   : > { %3234 = vmatprep.subr.bf16.mxu1 %v3588_v49  ;;  %v3346_v36 = vpack.c.bf16 %v1714_v35, %v1713_v34 }
  0xb5   : > { %3338 = vmatpush1.bf16.msra.mxu0 %v3337_v27  ;;  %v3262_v27 = vpack.c.bf16 %v1658_v24, %v1657_v23  ;;  %v1294_v24 = vld [vmem:[%s5475_s3 + $0x188] sm:$0xff] }
  0xb6   : > { %3236 = vmatpush1.bf16.msra.mxu1 %v3235_v41  ;;  %3339 = vmatprep.subr.bf16.mxu0 %v3588_v49  ;;  %v1718_v41 = vld [vmem:[%s4190_s15 + $0x2f8] sm:$0xff] }
  0xb7   : > { %3237 = vmatprep.subr.bf16.mxu1 %v3588_v49  ;;  %v3352_v42 = vpack.c.bf16 %v1718_v41, %v1717_v40  ;;  %v1274_v41 = vld [vmem:[%s5475_s3 + $0xe8] sm:$0xff] }
  0xb9   : > { %3341 = vmatpush1.bf16.msra.mxu0 %v3340_v30  ;;  %v1660_v30 = vld [vmem:[%s4190_s15 + $0x128] sm:$0xff] }
  0xba   : > { %3239 = vmatpush1.bf16.msra.mxu1 %v3238_v47  ;;  %3342 = vmatprep.subr.bf16.mxu0 %v3588_v49  ;;  %v887_v47 = vsub.s32 1, %v4323_v44  ;;  %v3265_v34 = vpack.c.bf16 %v1660_v30, %v1659_v29 }
  0xbb   : > { %3240 = vmatprep.subr.bf16.mxu1 %v3588_v49 }
  0xbc   : > { %v888_v50 = vrot.slane %v4331_v46, %v887_v47 }
  0xbd   : > { %3344 = vmatpush1.bf16.msra.mxu0 %v3343_v33  ;;  %v1267_v33 = vld [vmem:[%s5475_s3 + $0xb0] sm:$0xff] }
  0xbe   : > { %3242 = vmatpush1.bf16.msra.mxu1 %v3241_v56  ;;  %3345 = vmatprep.subr.bf16.mxu0 %v3588_v49 }
  0xbf   : > { %3243 = vmatprep.subr.bf16.mxu1 %v3588_v49 }
  0xc1   : > { %3347 = vmatpush1.bf16.msra.mxu0 %v3346_v36  ;;  %v1661_v36 = vld [vmem:[%s4190_s15 + $0x130] sm:$0xff] }
  0xc2   : > { %3245 = vmatpush1.bf16.msra.mxu1 %v3244_v62  ;;  %3348 = vmatprep.subr.bf16.mxu0 %v3588_v49  ;;  %v3268_v47 = vpack.c.bf16 %v1662_v37, %v1661_v36  ;;  %v1669_v36 = vld [vmem:[%s4190_s15 + $0x170] sm:$0xff]  ;;  %v1670_v37 = vld [vmem:[%s4190_s15 + $0x178] sm:$0xff] }
  0xc3   : > { %3246 = vmatprep.subr.bf16.mxu1 %v3588_v49 }
  0xc5   : > { %3350 = vmatpush1.bf16.msra.mxu0 %v3349_v39  ;;  %v1266_v39 = vld [vmem:[%s5475_s3 + $0xa8] sm:$0xff] }
  0xc6   : > { %3248 = vmatpush1.bf16.msra.mxu1 %v3247_v4  ;;  %3351 = vmatprep.subr.bf16.mxu0 %v3588_v49  ;;  %v904_v4 = vrot.slane %v4331_v46, %v903_v2 }
  0xc7   : > { %3249 = vmatprep.subr.bf16.mxu1 %v3588_v49 }
  0xc9   : > { %3353 = vmatpush1.bf16.msra.mxu0 %v3352_v42 }
  0xca   : > { %3251 = vmatpush1.bf16.msra.mxu1 %v3250_v10  ;;  %3354 = vmatprep.subr.bf16.mxu0 %v3588_v49 }
  0xcb   : > { %3252 = vmatprep.subr.bf16.mxu1 %v3588_v49 }
  0xce   : > { %3254 = vmatpush1.bf16.msra.mxu1 %v3253_v16 }
  0xcf   : > { %3255 = vmatprep.subr.bf16.mxu1 %v3588_v49 }
  0xd2   : > { %3257 = vmatpush1.bf16.msra.mxu1 %v3256_v22  ;;  %v3259_v22 = vpack.c.bf16 %v1656_v14, %v1655_v13 }
  0xd3   : > { %3258 = vmatprep.subr.bf16.mxu1 %v3588_v49 }
 0x143   : > { %v986_v51 = vpop.f32.mrb[0].mxu0 }
 0x144   : > { %v987_v52 = vadd.f32 %v986_v51, %v884_v48  ;;  %v988_v53 = vpop.f32.mrb[1].mxu0  ;;  %v1663_v51 = vld [vmem:[%s4190_s15 + $0x140] sm:$0xff] }
 0x145   : > { %v989_v56 = vadd.f32 %v988_v53, %v888_v50 }
 0x146   : > { %v2901_v57 = vmul.f32 -1.442695, %v987_v52  ;;  %v1664_v52 = vld [vmem:[%s4190_s15 + $0x148] sm:$0xff] }
 0x147   : > { %v2902_v58 = vmul.f32 -1.442695, %v989_v56  ;;  %v1273_v56 = vld [vmem:[%s5475_s3 + $0xe0] sm:$0xff] }
 0x148   : > { %3533 = vpow2.f32 %v2901_v57  ;;  %v1281_v57 = vld [vmem:[%s5475_s3 + $0x120] sm:$0xff] }
 0x149   : > { %3535 = vpow2.f32 %v2902_v58 }
 0x14c   : > { %v4337_v63 = vpop.f32.mrb[0].mxu1 }
 0x14d   : > { %v4339_v0 = vpop.f32.mrb[1].mxu1 }
 0x152   : > { %v3534_v59 = vpop.eup %3533 }
 0x153   : > { %v3536_v60 = vpop.eup %3535  ;;  %v1224_v61 = vadd.f32 1.0, %v3534_v59  ;;  %v3271_v59 = vpack.c.bf16 %v1664_v52, %v1663_v51  ;;  %v3280_v51 = vpack.c.bf16 %v1670_v37, %v1669_v36  ;;  %v1677_v36 = vld [vmem:[%s4190_s15 + $0x1b0] sm:$0xff]  ;;  %v1678_v37 = vld [vmem:[%s4190_s15 + $0x1b8] sm:$0xff] }
 0x154   : > { %v1225_v62 = vadd.f32 1.0, %v3536_v60 }
 0x155   : > { %3537 = vrcp.f32 %v1224_v61 }
 0x156   : > { %3539 = vrcp.f32 %v1225_v62  ;;  %v1665_v62 = vld [vmem:[%s4190_s15 + $0x150] sm:$0xff] }
 0x15f   : > { %v3538_v5 = vpop.eup %3537  ;;  %v1128_v6 = vpop.f32.mrb[2].mxu0 }
 0x160   : > { %v3540_v8 = vpop.eup %3539  ;;  %v4349_v9 = vrot.slane %v3538_v5, %v4326_v45  ;;  %v1129_v10 = vadd.f32 %v1128_v6, %v900_v3  ;;  %v1130_v11 = vpop.f32.mrb[3].mxu0  ;;  %v1280_v3 = vld [vmem:[%s5475_s3 + $0x118] sm:$0xff]  ;;  %v3274_v5 = vpack.c.bf16 %v1666_v1, %v1665_v62 }
 0x161   : > { %v4357_v15 = vrot.slane %v3540_v8, %v4326_v45  ;;  %v1131_v16 = vadd.f32 %v1130_v11, %v904_v4  ;;  %v1288_v4 = vld [vmem:[%s5475_s3 + $0x158] sm:$0xff]  ;;  %v1287_v8 = vld [vmem:[%s5475_s3 + $0x150] sm:$0xff]  ;;  %v1668_v11 = vld [vmem:[%s4190_s15 + $0x168] sm:$0xff] }
 0x162   : > { %v2905_v17 = vmul.f32 -1.442695, %v1129_v10  ;;  %v1448_v18 = vmul.f32 %v4349_v9, %v1245_v7  ;;  %v1455_v28 = vmul.f32 %v4349_v9, %v1252_v25  ;;  %v1462_v35 = vmul.f32 %v4349_v9, %v1259_v32  ;;  %v1667_v10 = vld [vmem:[%s4190_s15 + $0x160] sm:$0xff]  ;;  %v1302_v25 = vld [vmem:[%s5475_s3 + $0x1c8] sm:$0xff]  ;;  %v1721_v32 = vld [vmem:[%s4190_s15 + $0x310] sm:$0xff] }
 0x163   : > { %v2906_v20 = vmul.f32 -1.442695, %v1131_v16  ;;  %v1449_v21 = vmul.f32 %v4357_v15, %v1246_v12  ;;  %v1456_v54 = vmul.f32 %v4357_v15, %v1253_v19  ;;  %v1463_v31 = vmul.f32 %v4357_v15, %v1260_v26  ;;  %v1295_v12 = vld [vmem:[%s5475_s3 + $0x190] sm:$0xff]  ;;  %v1719_v19 = vld [vmem:[%s4190_s15 + $0x300] sm:$0xff] }
 0x164   : > { %3541 = vpow2.f32 %v2905_v17  ;;  %v1470_v38 = vmul.f32 %v4357_v15, %v1267_v33  ;;  %v1469_v50 = vmul.f32 %v4349_v9, %v1266_v39  ;;  %v1477_v53 = vmul.f32 %v4357_v15, %v1274_v41  ;;  %v1722_v33 = vld [vmem:[%s4190_s15 + $0x318] sm:$0xff]  ;;  %v1309_v39 = vld [vmem:[%s5475_s3 + $0x200] sm:$0xff] }
 0x165   : > { %3543 = vpow2.f32 %v2906_v20  ;;  %1799 = vmatprep.mubr.f32.mxu1 %v1449_v21  ;;  %v1476_v61 = vmul.f32 %v4349_v9, %v1273_v56  ;;  %v1484_v2 = vmul.f32 %v4357_v15, %v1281_v57  ;;  %v1483_v6 = vmul.f32 %v4349_v9, %v1280_v3  ;;  %v1720_v20 = vld [vmem:[%s4190_s15 + $0x308] sm:$0xff]  ;;  %v1263_v56 = vld [vmem:[%s5475_s3 + $0x90] sm:$0xff]  ;;  %v1671_v57 = vld [vmem:[%s4190_s15 + $0x180] sm:$0xff] }
 0x166   : > { %1800 = vmatmul.mubr.f32.vlgmr.msra.gmra.mrb[4].mxu1 %v1448_v18  ;;  %v1491_v7 = vmul.f32 %v4357_v15, %v1288_v4  ;;  %v1490_v17 = vmul.f32 %v4349_v9, %v1287_v8  ;;  %v1250_v18 = vld [vmem:[%s5475_s3 + $0x28] sm:$0xff]  ;;  %v3277_v21 = vpack.c.bf16 %v1668_v11, %v1667_v10  ;;  %v1498_v23 = vmul.f32 %v4357_v15, %v1295_v12  ;;  %v1315_v3 = vld [vmem:[%s5475_s3 + $0x230] sm:$0xff]  ;;  %v1674_v12 = vld [vmem:[%s4190_s15 + $0x198] sm:$0xff] }
 0x167   : > { %1804 = vmatprep.mubr.f32.mxu1 %v1456_v54  ;;  %3260 = vmatpush1.bf16.msra.mxu1 %v3259_v22  ;;  %v1249_v54 = vld [vmem:[%s5475_s3 + $0x20] sm:$0xff]  ;;  %v1497_v29 = vmul.f32 %v4349_v9, %v1294_v24  ;;  %v3358_v41 = vpack.c.bf16 %v1722_v33, %v1721_v32  ;;  %v1512_v52 = vmul.f32 %v4357_v15, %v1309_v39  ;;  %v1725_v4 = vld [vmem:[%s4190_s15 + $0x330] sm:$0xff]  ;;  %v1270_v10 = vld [vmem:[%s5475_s3 + $0xc8] sm:$0xff] }
 0x168   : > { %3261 = vmatprep.subr.bf16.mxu1 %v3588_v49  ;;  %v4406_v58 = vpop.f32.mrb[2].mxu1  ;;  %v1673_v11 = vld [vmem:[%s4190_s15 + $0x190] sm:$0xff]  ;;  %v1676_v24 = vld [vmem:[%s4190_s15 + $0x1a8] sm:$0xff] }
 0x169   : > { %v2997_v60 = vpop.f32.mrb[3].mxu1 }
 0x16a   : > { %1805 = vmatmul.mubr.f32.gmra.mrb[6].mxu1 %v1455_v28  ;;  %v1257_v28 = vld [vmem:[%s5475_s3 + $0x60] sm:$0xff]  ;;  %v1316_v60 = vld [vmem:[%s5475_s3 + $0x238] sm:$0xff] }
 0x16b   : > { %1809 = vmatprep.mubr.f32.mxu1 %v1463_v31  ;;  %3263 = vmatpush1.bf16.msra.mxu1 %v3262_v27  ;;  %v3355_v27 = vpack.c.bf16 %v1720_v20, %v1719_v19  ;;  %v1301_v31 = vld [vmem:[%s5475_s3 + $0x1c0] sm:$0xff]  ;;  %v1322_v20 = vld [vmem:[%s5475_s3 + $0x268] sm:$0xff] }
 0x16c   : > { %3264 = vmatprep.subr.bf16.mxu1 %v3588_v49  ;;  %v1525_v32 = vmul.f32 %v4349_v9, %v1322_v20  ;;  %v1298_v20 = vld [vmem:[%s5475_s3 + $0x1a8] sm:$0xff] }
 0x16e   : > { %v3542_v40 = vpop.eup %3541  ;;  %1810 = vmatmul.mubr.f32.gmra.mrb[8].mxu1 %v1462_v35  ;;  %v1256_v35 = vld [vmem:[%s5475_s3 + $0x58] sm:$0xff] }
 0x16f   : > { %v3544_v42 = vpop.eup %3543  ;;  %v1228_v43 = vadd.f32 1.0, %v3542_v40  ;;  %1814 = vmatprep.mubr.f32.mxu1 %v1470_v38  ;;  %3266 = vmatpush1.bf16.msra.mxu1 %v3265_v34  ;;  %v1505_v34 = vmul.f32 %v4357_v15, %v1302_v25  ;;  %v1264_v40 = vld [vmem:[%s5475_s3 + $0x98] sm:$0xff] }
 0x170   : > { %v1229_v48 = vadd.f32 1.0, %v3544_v42  ;;  %3267 = vmatprep.subr.bf16.mxu1 %v3588_v49  ;;  %v1504_v42 = vmul.f32 %v4349_v9, %v1301_v31 }
 0x171   : > { %3545 = vrcp.f32 %v1228_v43 }
 0x172   : > { %3547 = vrcp.f32 %v1229_v48  ;;  %1815 = vmatmul.mubr.f32.gmra.mrb[10].mxu1 %v1469_v50  ;;  %v1723_v48 = vld [vmem:[%s4190_s15 + $0x320] sm:$0xff]  ;;  %v1724_v50 = vld [vmem:[%s4190_s15 + $0x328] sm:$0xff] }
 0x173   : > { %1819 = vmatprep.mubr.f32.mxu1 %v1477_v53  ;;  %3269 = vmatpush1.bf16.msra.mxu1 %v3268_v47  ;;  %v1308_v47 = vld [vmem:[%s5475_s3 + $0x1f8] sm:$0xff]  ;;  %v3361_v62 = vpack.c.bf16 %v1724_v50, %v1723_v48  ;;  %v891_v50 = vsub.s32 2, %v4323_v44 }
 0x174   : > { %3270 = vmatprep.subr.bf16.mxu1 %v3588_v49  ;;  %v1511_v1 = vmul.f32 %v4349_v9, %v1308_v47  ;;  %v1337_v47 = vld [vmem:[%s5475_s3 + $0x2e0] sm:$0xff]  ;;  %v1292_v48 = vld [vmem:[%s5475_s3 + $0x178] sm:$0xff] }
 0x176   : > { %1820 = vmatmul.mubr.f32.gmra.mrb[12].mxu1 %v1476_v61  ;;  %v1271_v61 = vld [vmem:[%s5475_s3 + $0xd0] sm:$0xff] }
 0x177   : > { %1824 = vmatprep.mubr.f32.mxu1 %v1484_v2  ;;  %3272 = vmatpush1.bf16.msra.mxu1 %v3271_v59  ;;  %v1672_v59 = vld [vmem:[%s4190_s15 + $0x188] sm:$0xff] }
 0x178   : > { %3273 = vmatprep.subr.bf16.mxu1 %v3588_v49 }
 0x17a   : > { %1825 = vmatmul.mubr.f32.gmra.mrb[14].mxu1 %v1483_v6  ;;  %v3283_v6 = vpack.c.bf16 %v1672_v59, %v1671_v57  ;;  %v1679_v57 = vld [vmem:[%s4190_s15 + $0x1c0] sm:$0xff]  ;;  %v1680_v59 = vld [vmem:[%s4190_s15 + $0x1c8] sm:$0xff] }
 0x17b   : > { %v3546_v13 = vpop.eup %3545  ;;  %1829 = vmatprep.mubr.f32.mxu1 %v1491_v7  ;;  %3275 = vmatpush1.bf16.msra.mxu1 %v3274_v5  ;;  %v1726_v5 = vld [vmem:[%s4190_s15 + $0x338] sm:$0xff]  ;;  %v1519_v7 = vmul.f32 %v4357_v15, %v1316_v60 }
 0x17c   : > { %v3548_v14 = vpop.eup %3547  ;;  %v4431_v16 = vrot.slane %v3546_v13, %v4326_v45  ;;  %3276 = vmatprep.subr.bf16.mxu1 %v3588_v49  ;;  %v1323_v13 = vld [vmem:[%s5475_s3 + $0x270] sm:$0xff] }
 0x17d   : > { %v4441_v22 = vrot.slane %v3548_v14, %v4326_v45  ;;  %v1278_v14 = vld [vmem:[%s5475_s3 + $0x108] sm:$0xff] }
 0x17e   : > { %1830 = vmatmul.mubr.f32.gmra.mrb[16].mxu1 %v1490_v17  ;;  %v1452_v30 = vmul.f32 %v4431_v16, %v1249_v54  ;;  %v1459_v43 = vmul.f32 %v4431_v16, %v1256_v35  ;;  %v1466_v2 = vmul.f32 %v4431_v16, %v1263_v56  ;;  %v3364_v17 = vpack.c.bf16 %v1726_v5, %v1725_v4  ;;  %v1336_v56 = vld [vmem:[%s5475_s3 + $0x2d8] sm:$0xff]  ;;  %v1732_v4 = vld [vmem:[%s4190_s15 + $0x368] sm:$0xff] }
 0x17f   : > { %1834 = vmatprep.mubr.f32.mxu1 %v1498_v23  ;;  %v1453_v26 = vmul.f32 %v4441_v22, %v1250_v18  ;;  %3278 = vmatpush1.bf16.msra.mxu1 %v3277_v21  ;;  %v1460_v38 = vmul.f32 %v4441_v22, %v1257_v28  ;;  %v1467_v53 = vmul.f32 %v4441_v22, %v1264_v40  ;;  %v1675_v23 = vld [vmem:[%s4190_s15 + $0x1a0] sm:$0xff]  ;;  %v1728_v28 = vld [vmem:[%s4190_s15 + $0x348] sm:$0xff]  ;;  %v1284_v40 = vld [vmem:[%s5475_s3 + $0x138] sm:$0xff] }
 0x180   : > { %3279 = vmatprep.subr.bf16.mxu1 %v3588_v49  ;;  %v1474_v8 = vmul.f32 %v4441_v22, %v1271_v61  ;;  %v1518_v18 = vmul.f32 %v4349_v9, %v1315_v3  ;;  %v1473_v19 = vmul.f32 %v4431_v16, %v1270_v10  ;;  %v3286_v21 = vpack.c.bf16 %v1674_v12, %v1673_v11  ;;  %v1731_v3 = vld [vmem:[%s4190_s15 + $0x360] sm:$0xff]  ;;  %v1344_v5 = vld [vmem:[%s5475_s3 + $0x318] sm:$0xff]  ;;  %v1343_v12 = vld [vmem:[%s5475_s3 + $0x310] sm:$0xff] }
 0x181   : > { %2179 = vmatprep.mubr.f32.mxu0 %v1453_v26  ;;  %v1526_v54 = vmul.f32 %v4357_v15, %v1323_v13  ;;  %v1481_v25 = vmul.f32 %v4441_v22, %v1278_v14  ;;  %v1277_v26 = vld [vmem:[%s5475_s3 + $0x100] sm:$0xff]  ;;  %v3289_v31 = vpack.c.bf16 %v1676_v24, %v1675_v23  ;;  %v1540_v61 = vmul.f32 %v4357_v15, %v1337_v47  ;;  %v1681_v13 = vld [vmem:[%s4190_s15 + $0x1d0] sm:$0xff]  ;;  %v1682_v14 = vld [vmem:[%s4190_s15 + $0x1d8] sm:$0xff] }
 0x182   : > { %1835 = vmatmul.mubr.f32.gmra.mrb[18].mxu1 %v1497_v29  ;;  %2180 = vmatmul.mubr.f32.vlgmr.msra.gmra.mrb[4].mxu0 %v1452_v30  ;;  %v1330_v29 = vld [vmem:[%s5475_s3 + $0x2a8] sm:$0xff]  ;;  %v1285_v30 = vld [vmem:[%s5475_s3 + $0x140] sm:$0xff]  ;;  %v1480_v33 = vmul.f32 %v4431_v16, %v1277_v26  ;;  %v1539_v10 = vmul.f32 %v4349_v9, %v1336_v56  ;;  %v1733_v23 = vld [vmem:[%s4190_s15 + $0x370] sm:$0xff]  ;;  %v3298_v26 = vpack.c.bf16 %v1682_v14, %v1681_v13 }
 0x183   : > { %3356 = vmatpush3.bf16.msra.mxu0 %v3355_v27  ;;  %1839 = vmatprep.mubr.f32.mxu1 %v1505_v34  ;;  %v1727_v27 = vld [vmem:[%s4190_s15 + $0x340] sm:$0xff]  ;;  %v1488_v39 = vmul.f32 %v4441_v22, %v1285_v30  ;;  %v1734_v24 = vld [vmem:[%s4190_s15 + $0x378] sm:$0xff] }
 0x184   : > { %2184 = vmatprep.mubr.f32.mxu0 %v1460_v38  ;;  %3357 = vmatprep.subr.bf16.mxu0 %v3588_v49  ;;  %v1329_v34 = vld [vmem:[%s5475_s3 + $0x2a0] sm:$0xff]  ;;  %v3367_v35 = vpack.c.bf16 %v1728_v28, %v1727_v27  ;;  %v1533_v38 = vmul.f32 %v4357_v15, %v1330_v29  ;;  %v1546_v27 = vmul.f32 %v4349_v9, %v1343_v12  ;;  %v1350_v29 = vld [vmem:[%s5475_s3 + $0x348] sm:$0xff] }
 0x185   : > { %3281 = vmatpush1.bf16.msra.mxu1 %v3280_v51  ;;  %v3292_v51 = vpack.c.bf16 %v1678_v37, %v1677_v36  ;;  %v1501_v28 = vmul.f32 %v4431_v16, %v1298_v20  ;;  %v3376_v30 = vpack.c.bf16 %v1734_v24, %v1733_v23  ;;  %v1358_v36 = vld [vmem:[%s5475_s3 + $0x388] sm:$0xff]  ;;  %v1313_v37 = vld [vmem:[%s5475_s3 + $0x220] sm:$0xff] }
 0x186   : > { %1840 = vmatmul.mubr.f32.gmra.mrb[20].mxu1 %v1504_v42  ;;  %2185 = vmatmul.mubr.f32.gmra.mrb[6].mxu0 %v1459_v43  ;;  %v1729_v42 = vld [vmem:[%s4190_s15 + $0x350] sm:$0xff]  ;;  %v1730_v43 = vld [vmem:[%s4190_s15 + $0x358] sm:$0xff]  ;;  %v1516_v47 = vmul.f32 %v4441_v22, %v1313_v37  ;;  %v1333_v20 = vld [vmem:[%s5475_s3 + $0x2c0] sm:$0xff] }
 0x187   : > { %1844 = vmatprep.mubr.f32.mxu1 %v1512_v52  ;;  %2189 = vmatprep.mubr.f32.mxu0 %v1467_v53  ;;  %v1532_v52 = vmul.f32 %v4349_v9, %v1329_v34  ;;  %v1487_v53 = vmul.f32 %v4431_v16, %v1284_v40  ;;  %v3370_v60 = vpack.c.bf16 %v1730_v43, %v1729_v42  ;;  %v1683_v34 = vld [vmem:[%s4190_s15 + $0x1e0] sm:$0xff]  ;;  %v1386_v24 = vld [vmem:[%s5475_s3 + $0x468] sm:$0xff]  ;;  %v1392_v37 = vld [vmem:[%s5475_s3 + $0x498] sm:$0xff] }
 0x188   : > { %3359 = vmatpush3.bf16.msra.mxu0 %v3358_v41  ;;  %3282 = vmatprep.subr.bf16.mxu1 %v3588_v49  ;;  %v895_v41 = vsub.s32 3, %v4323_v44  ;;  %v1357_v40 = vld [vmem:[%s5475_s3 + $0x380] sm:$0xff]  ;;  %v1561_v43 = vmul.f32 %v4357_v15, %v1358_v36 }
 0x189   : > { %3360 = vmatprep.subr.bf16.mxu0 %v3588_v49  ;;  %3284 = vmatpush1.bf16.msra.mxu1 %v3283_v6  ;;  %v1299_v6 = vld [vmem:[%s5475_s3 + $0x1b0] sm:$0xff]  ;;  %v1560_v56 = vmul.f32 %v4349_v9, %v1357_v40  ;;  %v1595_v40 = vmul.f32 %v4349_v9, %v1392_v37 }
 0x18a   : > { %1845 = vmatmul.mubr.f32.gmra.mrb[22].mxu1 %v1511_v1  ;;  %2190 = vmatmul.mubr.f32.gmra.mrb[8].mxu0 %v1466_v2  ;;  %v1291_v1 = vld [vmem:[%s5475_s3 + $0x170] sm:$0xff]  ;;  %v896_v2 = vrot.slane %v4331_v46, %v895_v41 }
 0x18b   : > { %1849 = vmatprep.mubr.f32.mxu1 %v1519_v7  ;;  %2194 = vmatprep.mubr.f32.mxu0 %v1474_v8  ;;  %v892_v7 = vrot.slane %v4331_v46, %v891_v50  ;;  %v3295_v8 = vpack.c.bf16 %v1680_v59, %v1679_v57  ;;  %v1494_v11 = vmul.f32 %v4431_v16, %v1291_v1  ;;  %v1685_v50 = vld [vmem:[%s4190_s15 + $0x1f0] sm:$0xff] }
 0x18c   : > { %3362 = vmatpush3.bf16.msra.mxu0 %v3361_v62  ;;  %3285 = vmatprep.subr.bf16.mxu1 %v3588_v49  ;;  %v1495_v62 = vmul.f32 %v4441_v22, %v1292_v48  ;;  %v1312_v48 = vld [vmem:[%s5475_s3 + $0x218] sm:$0xff]  ;;  %v1319_v1 = vld [vmem:[%s5475_s3 + $0x250] sm:$0xff] }
 0x18d   : > { %3363 = vmatprep.subr.bf16.mxu0 %v3588_v49  ;;  %3287 = vmatpush1.bf16.msra.mxu1 %v3286_v21  ;;  %v1060_v21 = vadd.f32 %v4339_v0, %v896_v2  ;;  %v1058_v0 = vadd.f32 %v4337_v63, %v892_v7  ;;  %v1305_v63 = vld [vmem:[%s5475_s3 + $0x1e0] sm:$0xff]  ;;  %v1515_v57 = vmul.f32 %v4431_v16, %v1312_v48  ;;  %v1372_v2 = vld [vmem:[%s5475_s3 + $0x3f8] sm:$0xff]  ;;  %v1371_v7 = vld [vmem:[%s5475_s3 + $0x3f0] sm:$0xff] }
 0x18e   : > { %1850 = vmatmul.mubr.f32.gmra.mrb[24].mxu1 %v1518_v18  ;;  %2195 = vmatmul.mubr.f32.gmra.mrb[10].mxu0 %v1473_v19  ;;  %v1547_v18 = vmul.f32 %v4357_v15, %v1344_v5  ;;  %v1502_v19 = vmul.f32 %v4441_v22, %v1299_v6  ;;  %v1522_v5 = vmul.f32 %v4431_v16, %v1319_v1  ;;  %v1399_v48 = vld [vmem:[%s5475_s3 + $0x4d0] sm:$0xff]  ;;  %v1414_v1 = vld [vmem:[%s5475_s3 + $0x548] sm:$0xf] }
 0x18f   : > { %1854 = vmatprep.mubr.f32.mxu1 %v1526_v54  ;;  %2199 = vmatprep.mubr.f32.mxu0 %v1481_v25  ;;  %v1351_v54 = vld [vmem:[%s5475_s3 + $0x350] sm:$0xff]  ;;  %v1306_v25 = vld [vmem:[%s5475_s3 + $0x1e8] sm:$0xff]  ;;  %v2903_v41 = vmul.f32 -1.442695, %v1058_v0  ;;  %v1575_v6 = vmul.f32 %v4357_v15, %v1372_v2  ;;  %v1574_v13 = vmul.f32 %v4349_v9, %v1371_v7  ;;  %v1536_v0 = vmul.f32 %v4431_v16, %v1333_v20  ;;  %v1369_v2 = vld [vmem:[%s5475_s3 + $0x3e0] sm:$0xff] }
 0x190   : > { %3365 = vmatpush3.bf16.msra.mxu0 %v3364_v17  ;;  %3288 = vmatprep.subr.bf16.mxu1 %v3588_v49  ;;  %v3373_v17 = vpack.c.bf16 %v1732_v4, %v1731_v3  ;;  %v1327_v3 = vld [vmem:[%s5475_s3 + $0x290] sm:$0xff]  ;;  %v1617_v7 = vmul.f32 %v4357_v15, %v1414_v1  ;;  %v1410_v1 = vld [vmem:[%s5475_s3 + $0x528] sm:$0xff] }
 0x191   : > { %3366 = vmatprep.subr.bf16.mxu0 %v3588_v49  ;;  %3290 = vmatpush1.bf16.msra.mxu1 %v3289_v31  ;;  %v1554_v31 = vmul.f32 %v4357_v15, %v1351_v54  ;;  %v1341_v54 = vld [vmem:[%s5475_s3 + $0x300] sm:$0xff] }
 0x192   : > { %1855 = vmatmul.mubr.f32.gmra.mrb[26].mxu1 %v1525_v32  ;;  %2200 = vmatmul.mubr.f32.gmra.mrb[12].mxu0 %v1480_v33  ;;  %v1509_v32 = vmul.f32 %v4441_v22, %v1306_v25  ;;  %v2904_v33 = vmul.f32 -1.442695, %v1060_v21 }
 0x193   : > { %1859 = vmatprep.mubr.f32.mxu1 %v1533_v38  ;;  %2204 = vmatprep.mubr.f32.mxu0 %v1488_v39  ;;  %v1553_v38 = vmul.f32 %v4349_v9, %v1350_v29  ;;  %v1508_v39 = vmul.f32 %v4431_v16, %v1305_v63  ;;  %v1544_v29 = vmul.f32 %v4441_v22, %v1341_v54 }
 0x194   : > { %3368 = vmatpush3.bf16.msra.mxu0 %v3367_v35  ;;  %3291 = vmatprep.subr.bf16.mxu1 %v3588_v49  ;;  %v1684_v35 = vld [vmem:[%s4190_s15 + $0x1e8] sm:$0xff]  ;;  %3549 = vpow2.f32 %v2904_v33 }
 0x195   : > { %3369 = vmatprep.subr.bf16.mxu0 %v3588_v49  ;;  %3293 = vmatpush1.bf16.msra.mxu1 %v3292_v51  ;;  %v3301_v42 = vpack.c.bf16 %v1684_v35, %v1683_v34  ;;  %v1686_v51 = vld [vmem:[%s4190_s15 + $0x1f8] sm:$0xff]  ;;  %3551 = vpow2.f32 %v2903_v41 }
 0x196   : > { %1860 = vmatmul.mubr.f32.gmra.mrb[28].mxu1 %v1532_v52  ;;  %2205 = vmatmul.mubr.f32.gmra.mrb[14].mxu0 %v1487_v53  ;;  %v1365_v52 = vld [vmem:[%s5475_s3 + $0x3c0] sm:$0xff]  ;;  %v1320_v53 = vld [vmem:[%s5475_s3 + $0x258] sm:$0xff]  ;;  %v3304_v59 = vpack.c.bf16 %v1686_v51, %v1685_v50  ;;  %v1354_v50 = vld [vmem:[%s5475_s3 + $0x368] sm:$0xff] }
 0x197   : > { %1864 = vmatprep.mubr.f32.mxu1 %v1540_v61  ;;  %2209 = vmatprep.mubr.f32.mxu0 %v1495_v62  ;;  %v1523_v61 = vmul.f32 %v4441_v22, %v1320_v53  ;;  %v1364_v62 = vld [vmem:[%s5475_s3 + $0x3b8] sm:$0xff]  ;;  %v1407_v51 = vld [vmem:[%s5475_s3 + $0x510] sm:$0xff]  ;;  %v1602_v53 = vmul.f32 %v4349_v9, %v1399_v48 }
 0x198   : > { %3371 = vmatpush3.bf16.msra.mxu0 %v3370_v60  ;;  %3294 = vmatprep.subr.bf16.mxu1 %v3588_v49  ;;  %v1568_v60 = vmul.f32 %v4357_v15, %v1365_v52  ;;  %v1567_v4 = vmul.f32 %v4349_v9, %v1364_v62  ;;  %v1361_v62 = vld [vmem:[%s5475_s3 + $0x3a0] sm:$0xff] }
 0x199   : > { %3372 = vmatprep.subr.bf16.mxu0 %v3588_v49  ;;  %3296 = vmatpush1.bf16.msra.mxu1 %v3295_v8  ;;  %v1326_v8 = vld [vmem:[%s5475_s3 + $0x288] sm:$0xff] }
 0x19a   : > { %1865 = vmatmul.mubr.f32.gmra.mrb[30].mxu1 %v1539_v10  ;;  %2210 = vmatmul.mubr.f32.gmra.mrb[16].mxu0 %v1494_v11  ;;  %v1379_v10 = vld [vmem:[%s5475_s3 + $0x430] sm:$0xff]  ;;  %v1334_v11 = vld [vmem:[%s5475_s3 + $0x2c8] sm:$0xff]  ;;  %v1529_v14 = vmul.f32 %v4431_v16, %v1326_v8  ;;  %v1572_v8 = vmul.f32 %v4441_v22, %v1369_v2 }
 0x19b   : > { %1869 = vmatprep.mubr.f32.mxu1 %v1547_v18  ;;  %2214 = vmatprep.mubr.f32.mxu0 %v1502_v19  ;;  %v1537_v18 = vmul.f32 %v4441_v22, %v1334_v11  ;;  %v1378_v19 = vld [vmem:[%s5475_s3 + $0x428] sm:$0xff]  ;;  %v1368_v11 = vld [vmem:[%s5475_s3 + $0x3d8] sm:$0xff] }
 0x19c   : > { %3374 = vmatpush3.bf16.msra.mxu0 %v3373_v17  ;;  %3297 = vmatprep.subr.bf16.mxu1 %v3588_v49  ;;  %v1582_v17 = vmul.f32 %v4357_v15, %v1379_v10  ;;  %v1581_v25 = vmul.f32 %v4349_v9, %v1378_v19  ;;  %v1413_v10 = vld [vmem:[%s5475_s3 + $0x540] sm:$0xf]  ;;  %v1255_v19 = vld [vmem:[%s5475_s3 + $0x50] sm:$0xff]  ;;  %v1290_v2 = vld [vmem:[%s5475_s3 + $0x168] sm:$0xff] }
 0x19d   : > { %3375 = vmatprep.subr.bf16.mxu0 %v3588_v49  ;;  %3299 = vmatpush1.bf16.msra.mxu1 %v3298_v26  ;;  %v907_v26 = vsub.s32 6, %v4323_v44  ;;  %v1393_v44 = vld [vmem:[%s5475_s3 + $0x4a0] sm:$0xff] }
 0x19e   : > { %1870 = vmatmul.mubr.f32.gmra.mrb[32].mxu1 %v1546_v27  ;;  %2215 = vmatmul.mubr.f32.gmra.mrb[18].mxu0 %v1501_v28  ;;  %v3550_v12 = vpop.eup %3549  ;;  %v1589_v28 = vmul.f32 %v4357_v15, %v1386_v24  ;;  %v1596_v35 = vmul.f32 %v4357_v15, %v1393_v44 }
 0x19f   : > { %1874 = vmatprep.mubr.f32.mxu1 %v1554_v31  ;;  %2219 = vmatprep.mubr.f32.mxu0 %v1509_v32  ;;  %v3552_v21 = vpop.eup %3551  ;;  %v1227_v23 = vadd.f32 1.0, %v3550_v12  ;;  %v1340_v31 = vld [vmem:[%s5475_s3 + $0x2f8] sm:$0xff]  ;;  %v908_v34 = vrot.slane %v4331_v46, %v907_v26  ;;  %v1355_v46 = vld [vmem:[%s5475_s3 + $0x370] sm:$0xff]  ;;  %v1382_v26 = vld [vmem:[%s5475_s3 + $0x448] sm:$0xff] }
 0x1a0   : > { %3377 = vmatpush3.bf16.msra.mxu0 %v3376_v30  ;;  %3300 = vmatprep.subr.bf16.mxu1 %v3588_v49  ;;  %v1226_v27 = vadd.f32 1.0, %v3552_v21  ;;  %v1385_v30 = vld [vmem:[%s5475_s3 + $0x460] sm:$0xff]  ;;  %v1348_v32 = vld [vmem:[%s5475_s3 + $0x338] sm:$0xff]  ;;  %v1543_v33 = vmul.f32 %v4431_v16, %v1340_v31  ;;  %v1375_v21 = vld [vmem:[%s5475_s3 + $0x410] sm:$0xff]  ;;  %v1585_v31 = vmul.f32 %v4431_v16, %v1382_v26 }
 0x1a1   : > { %3302 = vmatpush1.bf16.msra.mxu1 %v3301_v42  ;;  %3553 = vrcp.f32 %v1227_v23  ;;  %v1588_v63 = vmul.f32 %v4349_v9, %v1385_v30  ;;  %v1551_v36 = vmul.f32 %v4441_v22, %v1348_v32  ;;  %v1200_v42 = vadd.f32 %v4406_v58, %v908_v34  ;;  %v1362_v58 = vld [vmem:[%s5475_s3 + $0x3a8] sm:$0xff]  ;;  %v1389_v34 = vld [vmem:[%s5475_s3 + $0x480] sm:$0xff] }
 0x1a2   : > { %1875 = vmatmul.mubr.f32.gmra.mrb[34].mxu1 %v1553_v38  ;;  %2220 = vmatmul.mubr.f32.gmra.mrb[20].mxu0 %v1508_v39  ;;  %3555 = vrcp.f32 %v1226_v27  ;;  %v1347_v38 = vld [vmem:[%s5475_s3 + $0x330] sm:$0xff]  ;;  %v1400_v39 = vld [vmem:[%s5475_s3 + $0x4d8] sm:$0xff]  ;;  %v1578_v54 = vmul.f32 %v4431_v16, %v1375_v21 }
 0x1a3   : > { %1879 = vmatprep.mubr.f32.mxu1 %v1561_v43  ;;  %2224 = vmatprep.mubr.f32.mxu0 %v1516_v47  ;;  %v1550_v41 = vmul.f32 %v4431_v16, %v1347_v38  ;;  %v1603_v43 = vmul.f32 %v4357_v15, %v1400_v39  ;;  %v1558_v47 = vmul.f32 %v4441_v22, %v1355_v46  ;;  %v1304_v21 = vld [vmem:[%s5475_s3 + $0x1d8] sm:$0xff] }
 0x1a4   : > { %3303 = vmatprep.subr.bf16.mxu1 %v3588_v49  ;;  %v1530_v49 = vmul.f32 %v4441_v22, %v1327_v3  ;;  %v1592_v38 = vmul.f32 %v4431_v16, %v1389_v34 }
 0x1a5   : > { %3305 = vmatpush1.bf16.msra.mxu1 %v3304_v59  ;;  %v1610_v59 = vmul.f32 %v4357_v15, %v1407_v51 }
 0x1a6   : > { %1880 = vmatmul.mubr.f32.gmra.mrb[36].mxu1 %v1560_v56  ;;  %2225 = vmatmul.mubr.f32.gmra.mrb[22].mxu0 %v1515_v57  ;;  %v1557_v56 = vmul.f32 %v4431_v16, %v1354_v50  ;;  %v2907_v57 = vmul.f32 -1.442695, %v1200_v42  ;;  %v1276_v42 = vld [vmem:[%s5475_s3 + $0xf8] sm:$0xff] }
 0x1a7   : > { %1884 = vmatprep.mubr.f32.mxu1 %v1568_v60  ;;  %2229 = vmatprep.mubr.f32.mxu0 %v1523_v61  ;;  %v1565_v60 = vmul.f32 %v4441_v22, %v1362_v58  ;;  %v1406_v61 = vld [vmem:[%s5475_s3 + $0x508] sm:$0xff]  ;;  %v1275_v58 = vld [vmem:[%s5475_s3 + $0xf0] sm:$0xff] }
 0x1a8   : > { %3557 = vpow2.f32 %v2907_v57 }
 0x1aa   : > { %1885 = vmatmul.mubr.f32.gmra.mrb[38].mxu1 %v1567_v4  ;;  %2230 = vmatmul.mubr.f32.gmra.mrb[24].mxu0 %v1522_v5  ;;  %v1609_v5 = vmul.f32 %v4349_v9, %v1406_v61 }
 0x1ab   : > { %1889 = vmatprep.mubr.f32.mxu1 %v1575_v6  ;;  %2234 = vmatprep.mubr.f32.mxu0 %v1530_v49  ;;  %v3554_v52 = vpop.eup %3553  ;;  %v1564_v6 = vmul.f32 %v4431_v16, %v1361_v62  ;;  %v1248_v49 = vld [vmem:[%s5475_s3 + $0x18] sm:$0xff]  ;;  %v1282_v62 = vld [vmem:[%s5475_s3 + $0x128] sm:$0xff] }
 0x1ac   : > { %v3556_v3 = vpop.eup %3555  ;;  %v4771_v4 = vrot.slane %v3554_v52, %v4326_v45  ;;  %v1403_v52 = vld [vmem:[%s5475_s3 + $0x4f0] sm:$0xff] }
 0x1ad   : > { %v4787_v12 = vrot.slane %v3556_v3, %v4326_v45  ;;  %v1418_v3 = vld [vmem:[%s5475_s3 + $0x568] sm:$0xf] }
 0x1ae   : > { %1890 = vmatmul.mubr.f32.gmra.mrb[40].mxu1 %v1574_v13  ;;  %2235 = vmatmul.mubr.f32.gmra.mrb[26].mxu0 %v1529_v14  ;;  %v1376_v13 = vld [vmem:[%s5475_s3 + $0x418] sm:$0xff]  ;;  %v1451_v15 = vmul.f32 %v4771_v4, %v1248_v49  ;;  %v1247_v14 = vld [vmem:[%s5475_s3 + $0x10] sm:$0xff]  ;;  %v1458_v24 = vmul.f32 %v4771_v4, %v1255_v19  ;;  %v1479_v50 = vmul.f32 %v4771_v4, %v1276_v42 }
 0x1af   : > { %1894 = vmatprep.mubr.f32.mxu1 %v1582_v17  ;;  %2239 = vmatprep.mubr.f32.mxu0 %v1537_v18  ;;  %v1616_v17 = vmul.f32 %v4349_v9, %v1413_v10  ;;  %v1571_v18 = vmul.f32 %v4431_v16, %v1368_v11  ;;  %v1579_v20 = vmul.f32 %v4441_v22, %v1376_v13  ;;  %v1383_v9 = vld [vmem:[%s5475_s3 + $0x450] sm:$0xff]  ;;  %v1289_v10 = vld [vmem:[%s5475_s3 + $0x160] sm:$0xff]  ;;  %v1296_v19 = vld [vmem:[%s5475_s3 + $0x198] sm:$0xff] }
 0x1b0   : > { %v1450_v23 = vmul.f32 %v4787_v12, %v1247_v14  ;;  %v1478_v57 = vmul.f32 %v4787_v12, %v1275_v58  ;;  %v1613_v49 = vmul.f32 %v4431_v16, %v1410_v1  ;;  %v1417_v11 = vld [vmem:[%s5475_s3 + $0x560] sm:$0xf]  ;;  %v1492_v14 = vmul.f32 %v4787_v12, %v1289_v10  ;;  %v1331_v42 = vld [vmem:[%s5475_s3 + $0x2b0] sm:$0xff]  ;;  %v1338_v58 = vld [vmem:[%s5475_s3 + $0x2e8] sm:$0xff] }
 0x1b2   : > { %1895 = vmatmul.mubr.f32.gmra.mrb[42].mxu1 %v1581_v25  ;;  %2240 = vmatmul.mubr.f32.gmra.mrb[28].mxu0 %v1536_v0  ;;  %v1586_v25 = vmul.f32 %v4441_v22, %v1383_v9  ;;  %v1254_v0 = vld [vmem:[%s5475_s3 + $0x48] sm:$0xff]  ;;  %v3558_v27 = vpop.eup %3557  ;;  %v1303_v9 = vld [vmem:[%s5475_s3 + $0x1d0] sm:$0xff] }
 0x1b3   : > { %1899 = vmatprep.mubr.f32.mxu1 %v1589_v28  ;;  %2244 = vmatprep.mubr.f32.mxu0 %v1544_v29  ;;  %v1262_v28 = vld [vmem:[%s5475_s3 + $0x88] sm:$0xff]  ;;  %v1457_v30 = vmul.f32 %v4787_v12, %v1254_v0  ;;  %v1230_v44 = vadd.f32 1.0, %v3558_v27 }
 0x1b4   : > { %v1390_v29 = vld [vmem:[%s5475_s3 + $0x488] sm:$0xff]  ;;  %v1465_v32 = vmul.f32 %v4771_v4, %v1262_v28  ;;  %v1265_v28 = vld [vmem:[%s5475_s3 + $0xa0] sm:$0xff] }
 0x1b5   : > { %3559 = vrcp.f32 %v1230_v44  ;;  %v1310_v27 = vld [vmem:[%s5475_s3 + $0x208] sm:$0xff] }
 0x1b6   : > { %1900 = vmatmul.mubr.f32.gmra.mrb[44].mxu1 %v1588_v63  ;;  %2245 = vmatmul.mubr.f32.gmra.mrb[30].mxu0 %v1543_v33  ;;  %v1593_v63 = vmul.f32 %v4441_v22, %v1390_v29  ;;  %v1261_v33 = vld [vmem:[%s5475_s3 + $0x80] sm:$0xff]  ;;  %v1318_v29 = vld [vmem:[%s5475_s3 + $0x248] sm:$0xff] }
 0x1b7   : > { %1904 = vmatprep.mubr.f32.mxu1 %v1596_v35  ;;  %2249 = vmatprep.mubr.f32.mxu0 %v1551_v36  ;;  %v1269_v35 = vld [vmem:[%s5475_s3 + $0xc0] sm:$0xff]  ;;  %v1464_v37 = vmul.f32 %v4787_v12, %v1261_v33  ;;  %v1521_v44 = vmul.f32 %v4771_v4, %v1318_v29  ;;  %v1335_v29 = vld [vmem:[%s5475_s3 + $0x2d0] sm:$0xff] }
 0x1b8   : > { %v1397_v36 = vld [vmem:[%s5475_s3 + $0x4c0] sm:$0xff]  ;;  %v1472_v39 = vmul.f32 %v4771_v4, %v1269_v35 }
 0x1b9   : > { %v1600_v46 = vmul.f32 %v4441_v22, %v1397_v36  ;;  %v1325_v33 = vld [vmem:[%s5475_s3 + $0x280] sm:$0xff] }
 0x1ba   : > { %1905 = vmatmul.mubr.f32.gmra.mrb[46].mxu1 %v1595_v40  ;;  %2250 = vmatmul.mubr.f32.gmra.mrb[32].mxu0 %v1550_v41  ;;  %v1268_v40 = vld [vmem:[%s5475_s3 + $0xb8] sm:$0xff]  ;;  %v1528_v36 = vmul.f32 %v4771_v4, %v1325_v33  ;;  %v1342_v33 = vld [vmem:[%s5475_s3 + $0x308] sm:$0xff] }
 0x1bb   : > { %1909 = vmatprep.mubr.f32.mxu1 %v1603_v43  ;;  %2254 = vmatprep.mubr.f32.mxu0 %v1558_v47  ;;  %v1396_v41 = vld [vmem:[%s5475_s3 + $0x4b8] sm:$0xff]  ;;  %v1471_v47 = vmul.f32 %v4787_v12, %v1268_v40 }
 0x1bc   : > { %v1404_v43 = vld [vmem:[%s5475_s3 + $0x4f8] sm:$0xff]  ;;  %v1599_v48 = vmul.f32 %v4431_v16, %v1396_v41 }
 0x1bd   : > { %v1607_v51 = vmul.f32 %v4441_v22, %v1404_v43  ;;  %v1286_v43 = vld [vmem:[%s5475_s3 + $0x148] sm:$0xff] }
 0x1be   : > { %1910 = vmatmul.mubr.f32.gmra.mrb[48].mxu1 %v1602_v53  ;;  %2255 = vmatmul.mubr.f32.gmra.mrb[34].mxu0 %v1557_v56  ;;  %v1283_v53 = vld [vmem:[%s5475_s3 + $0x130] sm:$0xff] }
 0x1bf   : > { %1914 = vmatprep.mubr.f32.mxu1 %v1610_v59  ;;  %2259 = vmatprep.mubr.f32.mxu0 %v1565_v60  ;;  %v1411_v56 = vld [vmem:[%s5475_s3 + $0x530] sm:$0xff]  ;;  %v1606_v59 = vmul.f32 %v4431_v16, %v1403_v52  ;;  %v1486_v60 = vmul.f32 %v4771_v4, %v1283_v53  ;;  %v1293_v52 = vld [vmem:[%s5475_s3 + $0x180] sm:$0xff]  ;;  %v1346_v53 = vld [vmem:[%s5475_s3 + $0x328] sm:$0xff] }
 0x1c0   : > { %v1614_v61 = vmul.f32 %v4441_v22, %v1411_v56  ;;  %v1541_v56 = vmul.f32 %v4787_v12, %v1338_v58 }
 0x1c2   : > { %1915 = vmatmul.mubr.f32.gmra.mrb[50].mxu1 %v1609_v5  ;;  %2260 = vmatmul.mubr.f32.gmra.mrb[36].mxu0 %v1564_v6  ;;  %v3560_v5 = vpop.eup %3559  ;;  %v1485_v6 = vmul.f32 %v4787_v12, %v1282_v62  ;;  %v1353_v62 = vld [vmem:[%s5475_s3 + $0x360] sm:$0xff] }
 0x1c3   : > { %1919 = vmatprep.mubr.f32.mxu1 %v1617_v7  ;;  %2264 = vmatprep.mubr.f32.mxu0 %v1572_v8  ;;  %v1493_v7 = vmul.f32 %v4771_v4, %v1290_v2  ;;  %v1621_v8 = vmul.f32 %v4441_v22, %v1418_v3  ;;  %v4899_v13 = vrot.slane %v3560_v5, %v4326_v45  ;;  %v1251_v22 = vld [vmem:[%s5475_s3 + $0x30] sm:$0xff]  ;;  %v1352_v5 = vld [vmem:[%s5475_s3 + $0x358] sm:$0xff] }
 0x1c4   : > { %v1556_v3 = vmul.f32 %v4771_v4, %v1353_v62  ;;  %v1370_v62 = vld [vmem:[%s5475_s3 + $0x3e8] sm:$0xff] }
 0x1c6   : > { %1920 = vmatmul.mubr.f32.gmra.mrb[52].mxu1 %v1616_v17  ;;  %2265 = vmatmul.mubr.f32.gmra.mrb[38].mxu0 %v1571_v18  ;;  %v1620_v17 = vmul.f32 %v4431_v16, %v1417_v11  ;;  %v1499_v16 = vmul.f32 %v4787_v12, %v1296_v19  ;;  %v1359_v11 = vld [vmem:[%s5475_s3 + $0x390] sm:$0xff]  ;;  %v1366_v19 = vld [vmem:[%s5475_s3 + $0x3c8] sm:$0xff] }
 0x1c7   : > { %2269 = vmatprep.mubr.f32.mxu0 %v1579_v20  ;;  %1989 = vmatprep.mubr.f32.mxu1 %v1451_v15  ;;  %v1297_v15 = vld [vmem:[%s5475_s3 + $0x1a0] sm:$0xff]  ;;  %v1454_v20 = vmul.f32 %v4899_v13, %v1251_v22  ;;  %v1367_v22 = vld [vmem:[%s5475_s3 + $0x3d0] sm:$0xff] }
 0x1c8   : > { %v1500_v18 = vmul.f32 %v4771_v4, %v1297_v15  ;;  %v1314_v15 = vld [vmem:[%s5475_s3 + $0x228] sm:$0xff] }
 0x1ca   : > { %1990 = vmatmul.mubr.f32.vlgmr.msra.gmra.mrb[4].mxu1 %v1450_v23  ;;  %2270 = vmatmul.mubr.f32.gmra.mrb[40].mxu0 %v1578_v54  ;;  %v1507_v23 = vmul.f32 %v4771_v4, %v1304_v21  ;;  %v1311_v54 = vld [vmem:[%s5475_s3 + $0x210] sm:$0xff]  ;;  %v1374_v21 = vld [vmem:[%s5475_s3 + $0x408] sm:$0xff] }
 0x1cb   : > { %1994 = vmatprep.mubr.f32.mxu1 %v1458_v24  ;;  %2274 = vmatprep.mubr.f32.mxu0 %v1586_v25  ;;  %v1258_v24 = vld [vmem:[%s5475_s3 + $0x68] sm:$0xff]  ;;  %v1506_v25 = vmul.f32 %v4787_v12, %v1303_v9  ;;  %v1514_v26 = vmul.f32 %v4771_v4, %v1311_v54  ;;  %v1577_v9 = vmul.f32 %v4771_v4, %v1374_v21  ;;  %v1328_v54 = vld [vmem:[%s5475_s3 + $0x298] sm:$0xff] }
 0x1cc   : > { %v1461_v0 = vmul.f32 %v4899_v13, %v1258_v24  ;;  %v1373_v24 = vld [vmem:[%s5475_s3 + $0x400] sm:$0xff] }
 0x1ce   : > { %1995 = vmatmul.mubr.f32.gmra.mrb[6].mxu1 %v1457_v30  ;;  %2275 = vmatmul.mubr.f32.gmra.mrb[42].mxu0 %v1585_v31  ;;  %v1513_v30 = vmul.f32 %v4787_v12, %v1310_v27  ;;  %v1468_v31 = vmul.f32 %v4899_v13, %v1265_v28  ;;  %v1380_v28 = vld [vmem:[%s5475_s3 + $0x438] sm:$0xff] }
 0x1cf   : > { %1999 = vmatprep.mubr.f32.mxu1 %v1465_v32  ;;  %2279 = vmatprep.mubr.f32.mxu0 %v1593_v63  ;;  %v1317_v32 = vld [vmem:[%s5475_s3 + $0x240] sm:$0xff]  ;;  %v1272_v63 = vld [vmem:[%s5475_s3 + $0xd8] sm:$0xff] }
 0x1d0   : > { %v1520_v34 = vmul.f32 %v4787_v12, %v1317_v32  ;;  %v1475_v35 = vmul.f32 %v4899_v13, %v1272_v63  ;;  %v1387_v63 = vld [vmem:[%s5475_s3 + $0x470] sm:$0xff] }
 0x1d2   : > { %2000 = vmatmul.mubr.f32.gmra.mrb[8].mxu1 %v1464_v37  ;;  %2280 = vmatmul.mubr.f32.gmra.mrb[44].mxu0 %v1592_v38  ;;  %v1324_v37 = vld [vmem:[%s5475_s3 + $0x278] sm:$0xff]  ;;  %v1279_v38 = vld [vmem:[%s5475_s3 + $0x110] sm:$0xff] }
 0x1d3   : > { %2004 = vmatprep.mubr.f32.mxu1 %v1472_v39  ;;  %2284 = vmatprep.mubr.f32.mxu0 %v1600_v46  ;;  %v1332_v39 = vld [vmem:[%s5475_s3 + $0x2b8] sm:$0xff]  ;;  %v1527_v46 = vmul.f32 %v4787_v12, %v1324_v37  ;;  %v1482_v40 = vmul.f32 %v4899_v13, %v1279_v38  ;;  %v1394_v38 = vld [vmem:[%s5475_s3 + $0x4a8] sm:$0xff] }
 0x1d4   : > { %v1535_v41 = vmul.f32 %v4771_v4, %v1332_v39  ;;  %v1349_v39 = vld [vmem:[%s5475_s3 + $0x340] sm:$0xff] }
 0x1d6   : > { %2005 = vmatmul.mubr.f32.gmra.mrb[10].mxu1 %v1471_v47  ;;  %2285 = vmatmul.mubr.f32.gmra.mrb[46].mxu0 %v1599_v48  ;;  %v1339_v47 = vld [vmem:[%s5475_s3 + $0x2f0] sm:$0xff]  ;;  %v1534_v48 = vmul.f32 %v4787_v12, %v1331_v42 }
 0x1d7   : > { %2009 = vmatprep.mubr.f32.mxu1 %v1479_v50  ;;  %2289 = vmatprep.mubr.f32.mxu0 %v1607_v51  ;;  %v1489_v50 = vmul.f32 %v4899_v13, %v1286_v43  ;;  %v1542_v51 = vmul.f32 %v4771_v4, %v1339_v47  ;;  %v1401_v43 = vld [vmem:[%s5475_s3 + $0x4e0] sm:$0xff]  ;;  %v1356_v47 = vld [vmem:[%s5475_s3 + $0x378] sm:$0xff] }
 0x1da   : > { %2010 = vmatmul.mubr.f32.gmra.mrb[12].mxu1 %v1478_v57  ;;  %2290 = vmatmul.mubr.f32.gmra.mrb[48].mxu0 %v1606_v59  ;;  %v1496_v57 = vmul.f32 %v4899_v13, %v1293_v52  ;;  %v1549_v59 = vmul.f32 %v4771_v4, %v1346_v53  ;;  %v1408_v52 = vld [vmem:[%s5475_s3 + $0x518] sm:$0xff]  ;;  %v1363_v53 = vld [vmem:[%s5475_s3 + $0x3b0] sm:$0xff] }
 0x1db   : > { %2014 = vmatprep.mubr.f32.mxu1 %v1486_v60  ;;  %2294 = vmatprep.mubr.f32.mxu0 %v1614_v61  ;;  %v1345_v60 = vld [vmem:[%s5475_s3 + $0x320] sm:$0xff]  ;;  %v1300_v61 = vld [vmem:[%s5475_s3 + $0x1b8] sm:$0xff] }
 0x1dc   : > { %v1548_v1 = vmul.f32 %v4787_v12, %v1345_v60  ;;  %v1503_v2 = vmul.f32 %v4899_v13, %v1300_v61  ;;  %v1415_v61 = vld [vmem:[%s5475_s3 + $0x550] sm:$0xf] }
 0x1de   : > { %2015 = vmatmul.mubr.f32.gmra.mrb[14].mxu1 %v1485_v6  ;;  %2295 = vmatmul.mubr.f32.gmra.mrb[50].mxu0 %v1613_v49  ;;  %v1307_v6 = vld [vmem:[%s5475_s3 + $0x1f0] sm:$0xff]  ;;  %v1360_v49 = vld [vmem:[%s5475_s3 + $0x398] sm:$0xff] }
 0x1df   : > { %2019 = vmatprep.mubr.f32.mxu1 %v1493_v7  ;;  %2299 = vmatprep.mubr.f32.mxu0 %v1621_v8  ;;  %v1555_v7 = vmul.f32 %v4787_v12, %v1352_v5  ;;  %v1510_v8 = vmul.f32 %v4899_v13, %v1307_v6  ;;  %v1563_v10 = vmul.f32 %v4771_v4, %v1360_v49  ;;  %v1384_v5 = vld [vmem:[%s5475_s3 + $0x458] sm:$0xff]  ;;  %v1391_v6 = vld [vmem:[%s5475_s3 + $0x490] sm:$0xff] }
 0x1e0   : > { %v1594_v49 = vmul.f32 %v4899_v13, %v1391_v6 }
 0x1e2   : > { %2020 = vmatmul.mubr.f32.gmra.mrb[16].mxu1 %v1492_v14  ;;  %2300 = vmatmul.mubr.f32.gmra.mrb[52].mxu0 %v1620_v17  ;;  %v1562_v14 = vmul.f32 %v4787_v12, %v1359_v11  ;;  %v1517_v17 = vmul.f32 %v4899_v13, %v1314_v15  ;;  %v1412_v15 = vld [vmem:[%s5475_s3 + $0x538] sm:$0xff] }
 0x1e3   : > { %2024 = vmatprep.mubr.f32.mxu1 %v1500_v18  ;;  %3030 = vmatprep.mubr.msk.f32.mxu0 %vm3589_vm1, %v3587_v55  ;;  %v1570_v18 = vmul.f32 %v4771_v4, %v1367_v22  ;;  %v1615_v22 = vmul.f32 %v4899_v13, %v1412_v15 }
 0x1e6   : > { %2025 = vmatmul.mubr.f32.gmra.mrb[18].mxu1 %v1499_v16  ;;  %3031 = vmatmul.mubr.f32.vlgmr.msra.gmra.mrb[4].mxu0 %v1454_v20  ;;  %v1321_v20 = vld [vmem:[%s5475_s3 + $0x260] sm:$0xff]  ;;  %v1569_v16 = vmul.f32 %v4787_v12, %v1366_v19 }
 0x1e7   : > { %2029 = vmatprep.mubr.f32.mxu1 %v1507_v23  ;;  %3033 = vmatprep.mubr.msk.f32.mxu0 %vm3589_vm1, %v3587_v55  ;;  %v1524_v23 = vmul.f32 %v4899_v13, %v1321_v20 }
 0x1ea   : > { %2030 = vmatmul.mubr.f32.gmra.mrb[20].mxu1 %v1506_v25  ;;  %3034 = vmatmul.mubr.f32.gmra.mrb[6].mxu0 %v1461_v0  ;;  %v1381_v25 = vld [vmem:[%s5475_s3 + $0x440] sm:$0xff]  ;;  %v1576_v0 = vmul.f32 %v4787_v12, %v1373_v24 }
 0x1eb   : > { %2034 = vmatprep.mubr.f32.mxu1 %v1514_v26  ;;  %3036 = vmatprep.mubr.msk.f32.mxu0 %vm3589_vm1, %v3587_v55  ;;  %v1531_v26 = vmul.f32 %v4899_v13, %v1328_v54  ;;  %v1584_v27 = vmul.f32 %v4771_v4, %v1381_v25 }
 0x1ee   : > { %2035 = vmatmul.mubr.f32.gmra.mrb[22].mxu1 %v1513_v30  ;;  %3037 = vmatmul.mubr.f32.gmra.mrb[8].mxu0 %v1468_v31  ;;  %v1388_v30 = vld [vmem:[%s5475_s3 + $0x478] sm:$0xff]  ;;  %v1583_v31 = vmul.f32 %v4787_v12, %v1380_v28 }
 0x1ef   : > { %2039 = vmatprep.mubr.f32.mxu1 %v1521_v44  ;;  %3039 = vmatprep.mubr.msk.f32.mxu0 %vm3589_vm1, %v3587_v55  ;;  %v1538_v44 = vmul.f32 %v4899_v13, %v1335_v29  ;;  %v1591_v32 = vmul.f32 %v4771_v4, %v1388_v30 }
 0x1f2   : > { %2040 = vmatmul.mubr.f32.gmra.mrb[24].mxu1 %v1520_v34  ;;  %3040 = vmatmul.mubr.f32.gmra.mrb[10].mxu0 %v1475_v35  ;;  %v1395_v34 = vld [vmem:[%s5475_s3 + $0x4b0] sm:$0xff]  ;;  %v1590_v35 = vmul.f32 %v4787_v12, %v1387_v63 }
 0x1f3   : > { %2044 = vmatprep.mubr.f32.mxu1 %v1528_v36  ;;  %3042 = vmatprep.mubr.msk.f32.mxu0 %vm3589_vm1, %v3587_v55  ;;  %v1545_v36 = vmul.f32 %v4899_v13, %v1342_v33  ;;  %v1598_v37 = vmul.f32 %v4771_v4, %v1395_v34 }
 0x1f6   : > { %2045 = vmatmul.mubr.f32.gmra.mrb[26].mxu1 %v1527_v46  ;;  %3043 = vmatmul.mubr.f32.gmra.mrb[12].mxu0 %v1482_v40  ;;  %v1402_v46 = vld [vmem:[%s5475_s3 + $0x4e8] sm:$0xff]  ;;  %v1597_v40 = vmul.f32 %v4787_v12, %v1394_v38 }
 0x1f7   : > { %2049 = vmatprep.mubr.f32.mxu1 %v1535_v41  ;;  %3045 = vmatprep.mubr.msk.f32.mxu0 %vm3589_vm1, %v3587_v55  ;;  %v1552_v41 = vmul.f32 %v4899_v13, %v1349_v39  ;;  %v1605_v42 = vmul.f32 %v4771_v4, %v1402_v46 }
 0x1fa   : > { %2050 = vmatmul.mubr.f32.gmra.mrb[28].mxu1 %v1534_v48  ;;  %3046 = vmatmul.mubr.f32.gmra.mrb[14].mxu0 %v1489_v50  ;;  %v1409_v48 = vld [vmem:[%s5475_s3 + $0x520] sm:$0xff]  ;;  %v1604_v50 = vmul.f32 %v4787_v12, %v1401_v43 }
 0x1fb   : > { %2054 = vmatprep.mubr.f32.mxu1 %v1542_v51  ;;  %3048 = vmatprep.mubr.msk.f32.mxu0 %vm3589_vm1, %v3587_v55  ;;  %v1559_v51 = vmul.f32 %v4899_v13, %v1356_v47  ;;  %v1612_v58 = vmul.f32 %v4771_v4, %v1409_v48 }
 0x1fe   : > { %2055 = vmatmul.mubr.f32.gmra.mrb[30].mxu1 %v1541_v56  ;;  %3049 = vmatmul.mubr.f32.gmra.mrb[16].mxu0 %v1496_v57  ;;  %v1416_v56 = vld [vmem:[%s5475_s3 + $0x558] sm:$0xf]  ;;  %v1611_v57 = vmul.f32 %v4787_v12, %v1408_v52 }
 0x1ff   : > { %2059 = vmatprep.mubr.f32.mxu1 %v1549_v59  ;;  %3051 = vmatprep.mubr.msk.f32.mxu0 %vm3589_vm1, %v3587_v55  ;;  %v1566_v59 = vmul.f32 %v4899_v13, %v1363_v53  ;;  %v1619_v60 = vmul.f32 %v4771_v4, %v1416_v56  ;;  %v1377_v4 = vld [vmem:[%s5475_s3 + $0x420] sm:$0xff] }
 0x202   : > { %2060 = vmatmul.mubr.f32.gmra.mrb[32].mxu1 %v1548_v1  ;;  %3052 = vmatmul.mubr.f32.gmra.mrb[18].mxu0 %v1503_v2  ;;  %v1618_v1 = vmul.f32 %v4787_v12, %v1415_v61  ;;  %v1573_v2 = vmul.f32 %v4899_v13, %v1370_v62  ;;  %v1587_v12 = vmul.f32 %v4899_v13, %v1384_v5 }
 0x203   : > { %2064 = vmatprep.mubr.f32.mxu1 %v1556_v3  ;;  %3054 = vmatprep.mubr.msk.f32.mxu0 %vm3589_vm1, %v3587_v55  ;;  %v1580_v3 = vmul.f32 %v4899_v13, %v1377_v4 }
 0x206   : > { %2065 = vmatmul.mubr.f32.gmra.mrb[34].mxu1 %v1555_v7  ;;  %3055 = vmatmul.mubr.f32.gmra.mrb[20].mxu0 %v1510_v8  ;;  %v1398_v7 = vld [vmem:[%s5475_s3 + $0x4c8] sm:$0xff] }
 0x207   : > { %2069 = vmatprep.mubr.f32.mxu1 %v1563_v10  ;;  %3057 = vmatprep.mubr.msk.f32.mxu0 %vm3589_vm1, %v3587_v55  ;;  %v1601_v8 = vmul.f32 %v4899_v13, %v1398_v7  ;;  %v1405_v10 = vld [vmem:[%s5475_s3 + $0x500] sm:$0xff] }
 0x208   : > { %v1608_v11 = vmul.f32 %v4899_v13, %v1405_v10 }
 0x20a   : > { %2070 = vmatmul.mubr.f32.gmra.mrb[36].mxu1 %v1562_v14  ;;  %3058 = vmatmul.mubr.f32.gmra.mrb[22].mxu0 %v1517_v17  ;;  %v1419_v14 = vld [vmem:[%s5475_s3 + $0x570] sm:$0xf] }
 0x20b   : > { %2074 = vmatprep.mubr.f32.mxu1 %v1570_v18  ;;  %3060 = vmatprep.mubr.msk.f32.mxu0 %vm3589_vm1, %v3587_v55  ;;  %v1622_v17 = vmul.f32 %v4899_v13, %v1419_v14 }
 0x20e   : > { %2075 = vmatmul.mubr.f32.gmra.mrb[38].mxu1 %v1569_v16  ;;  %3061 = vmatmul.mubr.f32.gmra.mrb[24].mxu0 %v1524_v23 }
 0x20f   : > { %2079 = vmatprep.mubr.f32.mxu1 %v1577_v9  ;;  %3063 = vmatprep.mubr.msk.f32.mxu0 %vm3589_vm1, %v3587_v55 }
 0x212   : > { %2080 = vmatmul.mubr.f32.gmra.mrb[40].mxu1 %v1576_v0  ;;  %3064 = vmatmul.mubr.f32.gmra.mrb[26].mxu0 %v1531_v26 }
 0x213   : > { %2084 = vmatprep.mubr.f32.mxu1 %v1584_v27  ;;  %3066 = vmatprep.mubr.msk.f32.mxu0 %vm3589_vm1, %v3587_v55 }
 0x216   : > { %2085 = vmatmul.mubr.f32.gmra.mrb[42].mxu1 %v1583_v31  ;;  %3067 = vmatmul.mubr.f32.gmra.mrb[28].mxu0 %v1538_v44 }
 0x217   : > { %2089 = vmatprep.mubr.f32.mxu1 %v1591_v32  ;;  %3069 = vmatprep.mubr.msk.f32.mxu0 %vm3589_vm1, %v3587_v55 }
 0x21a   : > { %2090 = vmatmul.mubr.f32.gmra.mrb[44].mxu1 %v1590_v35  ;;  %3070 = vmatmul.mubr.f32.gmra.mrb[30].mxu0 %v1545_v36 }
 0x21b   : > { %2094 = vmatprep.mubr.f32.mxu1 %v1598_v37  ;;  %3072 = vmatprep.mubr.msk.f32.mxu0 %vm3589_vm1, %v3587_v55 }
 0x21e   : > { %2095 = vmatmul.mubr.f32.gmra.mrb[46].mxu1 %v1597_v40  ;;  %3073 = vmatmul.mubr.f32.gmra.mrb[32].mxu0 %v1552_v41 }
 0x21f   : > { %2099 = vmatprep.mubr.f32.mxu1 %v1605_v42  ;;  %3075 = vmatprep.mubr.msk.f32.mxu0 %vm3589_vm1, %v3587_v55 }
 0x222   : > { %2100 = vmatmul.mubr.f32.gmra.mrb[48].mxu1 %v1604_v50  ;;  %3076 = vmatmul.mubr.f32.gmra.mrb[34].mxu0 %v1559_v51 }
 0x223   : > { %2104 = vmatprep.mubr.f32.mxu1 %v1612_v58  ;;  %3078 = vmatprep.mubr.msk.f32.mxu0 %vm3589_vm1, %v3587_v55 }
 0x226   : > { %2105 = vmatmul.mubr.f32.gmra.mrb[50].mxu1 %v1611_v57  ;;  %3079 = vmatmul.mubr.f32.gmra.mrb[36].mxu0 %v1566_v59 }
 0x227   : > { %2109 = vmatprep.mubr.f32.mxu1 %v1619_v60  ;;  %3081 = vmatprep.mubr.msk.f32.mxu0 %vm3589_vm1, %v3587_v55 }
 0x22a   : > { %2110 = vmatmul.mubr.f32.gmra.mrb[52].mxu1 %v1618_v1  ;;  %3082 = vmatmul.mubr.f32.gmra.mrb[38].mxu0 %v1573_v2 }
 0x22b   : > { %3084 = vmatprep.mubr.msk.f32.mxu0 %vm3589_vm1, %v3587_v55 }
 0x22e   : > { %3085 = vmatmul.mubr.f32.gmra.mrb[40].mxu0 %v1580_v3 }
 0x22f   : > { %3087 = vmatprep.mubr.msk.f32.mxu0 %vm3589_vm1, %v3587_v55 }
 0x232   : > { %3088 = vmatmul.mubr.f32.gmra.mrb[42].mxu0 %v1587_v12 }
 0x233   : > { %3090 = vmatprep.mubr.msk.f32.mxu0 %vm3589_vm1, %v3587_v55 }
 0x236   : > { %3091 = vmatmul.mubr.f32.gmra.mrb[44].mxu0 %v1594_v49 }
 0x237   : > { %3093 = vmatprep.mubr.msk.f32.mxu0 %vm3589_vm1, %v3587_v55 }
 0x23a   : > { %3094 = vmatmul.mubr.f32.gmra.mrb[46].mxu0 %v1601_v8 }
 0x23b   : > { %3096 = vmatprep.mubr.msk.f32.mxu0 %vm3589_vm1, %v3587_v55 }
 0x23e   : > { %3097 = vmatmul.mubr.f32.gmra.mrb[48].mxu0 %v1608_v11 }
 0x23f   : > { %3099 = vmatprep.mubr.msk.f32.mxu0 %vm3589_vm1, %v3587_v55 }
 0x242   : > { %3100 = vmatmul.mubr.f32.gmra.mrb[50].mxu0 %v1615_v22 }
 0x243   : > { %3102 = vmatprep.mubr.msk.f32.mxu0 %vm3589_vm1, %v3587_v55 }
 0x246   : > { %3103 = vmatmul.mubr.f32.gmra.mrb[52].mxu0 %v1622_v17 }
 0x29d   : > { %v1991_v18 = vpop.f32.mrb[4].mxu1 }
 0x29e   : > { %v1993_v19 = vpop.f32.mrb[5].mxu1 }
 0x2a1   : > { %v1996_v20 = vpop.f32.mrb[6].mxu1 }
 0x2a2   : > { %v1998_v21 = vpop.f32.mrb[7].mxu1 }
 0x2a5   : > { %v2001_v16 = vpop.f32.mrb[8].mxu1 }
 0x2a6   : > { %v2003_v23 = vpop.f32.mrb[9].mxu1 }
 0x2a9   : > { %v2006_v9 = vpop.f32.mrb[10].mxu1 }
 0x2aa   : > { %v2008_v24 = vpop.f32.mrb[11].mxu1 }
 0x2ad   : > { %v2011_v54 = vpop.f32.mrb[12].mxu1 }
 0x2ae   : > { %v2013_v25 = vpop.f32.mrb[13].mxu1 }
 0x2b1   : > { %v2016_v0 = vpop.f32.mrb[14].mxu1 }
 0x2b2   : > { %v2018_v26 = vpop.f32.mrb[15].mxu1 }
 0x2b5   : > { %v2021_v27 = vpop.f32.mrb[16].mxu1 }
 0x2b6   : > { %v2023_v28 = vpop.f32.mrb[17].mxu1 }
 0x2b9   : > { %v2026_v29 = vpop.f32.mrb[18].mxu1  ;;  %v2371_v30 = vpop.f32.mrb[4].mxu0 }
 0x2ba   : > { %v5197_v55 = vadd.f32 %v2371_v30, %v1991_v18  ;;  %v2028_v13 = vpop.f32.mrb[19].mxu1  ;;  %v3032_v31 = vpop.f32.mrb[5].mxu0 }
 0x2bc   : > { %v2527_v22 = vmul.f32 %v5197_v55, %v5197_v55 }
 0x2bd   : > { %v2031_v44 = vpop.f32.mrb[20].mxu1  ;;  %v2376_v32 = vpop.f32.mrb[6].mxu0 }
 0x2be   : > { %v5199_v63 = vadd.f32 %v2376_v32, %v1996_v20  ;;  %v2033_v33 = vpop.f32.mrb[21].mxu1  ;;  %v3035_v34 = vpop.f32.mrb[7].mxu0 }
 0x2c0   : > { %v2528_v8 = vmul.f32 %v5199_v63, %v5199_v63  ;;  %v2495_v14 = vadd.f32 %v5199_v63, %v5197_v55 }
 0x2c1   : > { %v2036_v35 = vpop.f32.mrb[22].mxu1  ;;  %v2381_v36 = vpop.f32.mrb[8].mxu0 }
 0x2c2   : > { %v5201_v37 = vadd.f32 %v2381_v36, %v2001_v16  ;;  %v2038_v38 = vpop.f32.mrb[23].mxu1  ;;  %v3038_v39 = vpop.f32.mrb[9].mxu0  ;;  %v2552_v20 = vadd.f32 %v2528_v8, %v2527_v22 }
 0x2c4   : > { %v2529_v17 = vmul.f32 %v5201_v37, %v5201_v37  ;;  %v2496_v21 = vadd.f32 %v5201_v37, %v2495_v14 }
 0x2c5   : > { %v2041_v46 = vpop.f32.mrb[24].mxu1  ;;  %v2386_v40 = vpop.f32.mrb[10].mxu0 }
 0x2c6   : > { %v5203_v41 = vadd.f32 %v2386_v40, %v2006_v9  ;;  %v2043_v42 = vpop.f32.mrb[25].mxu1  ;;  %v3041_v43 = vpop.f32.mrb[11].mxu0 }
 0x2c8   : > { %v2530_v16 = vmul.f32 %v5203_v41, %v5203_v41  ;;  %v2497_v25 = vadd.f32 %v5203_v41, %v2496_v21 }
 0x2c9   : > { %v2046_v47 = vpop.f32.mrb[26].mxu1  ;;  %v2391_v48 = vpop.f32.mrb[12].mxu0 }
 0x2ca   : > { %v5205_v50 = vadd.f32 %v2391_v48, %v2011_v54  ;;  %v2048_v51 = vpop.f32.mrb[27].mxu1  ;;  %v3044_v58 = vpop.f32.mrb[13].mxu0  ;;  %v2553_v54 = vadd.f32 %v2552_v20, %v2529_v17 }
 0x2cc   : > { %v2554_v28 = vadd.f32 %v2553_v54, %v2530_v16 }
 0x2cd   : > { %v2051_v52 = vpop.f32.mrb[28].mxu1  ;;  %v2396_v53 = vpop.f32.mrb[14].mxu0 }
 0x2ce   : > { %v5207_v56 = vadd.f32 %v2396_v53, %v2016_v0  ;;  %v2053_v57 = vpop.f32.mrb[29].mxu1  ;;  %v3047_v59 = vpop.f32.mrb[15].mxu0  ;;  %v2531_v0 = vmul.f32 %v5205_v50, %v5205_v50 }
 0x2d0   : > { %v2532_v30 = vmul.f32 %v5207_v56, %v5207_v56  ;;  %v2555_v32 = vadd.f32 %v2554_v28, %v2531_v0 }
 0x2d1   : > { %v5209_v60 = vpop.f32.mrb[30].mxu1  ;;  %v2401_v61 = vpop.f32.mrb[16].mxu0 }
 0x2d2   : > { %v5211_v62 = vadd.f32 %v2401_v61, %v2021_v27  ;;  %v2058_v1 = vpop.f32.mrb[31].mxu1  ;;  %v3050_v2 = vpop.f32.mrb[17].mxu0  ;;  %v2556_v38 = vadd.f32 %v2555_v32, %v2532_v30 }
 0x2d4   : > { %v2533_v34 = vmul.f32 %v5211_v62, %v5211_v62 }
 0x2d5   : > { %v5213_v4 = vpop.f32.mrb[32].mxu1  ;;  %v2406_v3 = vpop.f32.mrb[18].mxu0 }
 0x2d6   : > { %v5215_v5 = vadd.f32 %v2406_v3, %v2026_v29  ;;  %v2063_v12 = vpop.f32.mrb[33].mxu1  ;;  %v3053_v6 = vpop.f32.mrb[19].mxu0  ;;  %v2498_v29 = vadd.f32 %v5205_v50, %v2497_v25  ;;  %v2557_v48 = vadd.f32 %v2556_v38, %v2533_v34 }
 0x2d8   : > { %v2499_v33 = vadd.f32 %v5207_v56, %v2498_v29  ;;  %v2534_v40 = vmul.f32 %v5215_v5, %v5215_v5 }
 0x2d9   : > { %v5217_v49 = vpop.f32.mrb[34].mxu1  ;;  %v2411_v7 = vpop.f32.mrb[20].mxu0 }
 0x2da   : > { %v5221_v10 = vadd.f32 %v2411_v7, %v2031_v44  ;;  %v2068_v11 = vpop.f32.mrb[35].mxu1  ;;  %v3056_v15 = vpop.f32.mrb[21].mxu0  ;;  %v2500_v39 = vadd.f32 %v5211_v62, %v2499_v33  ;;  %v2558_v59 = vadd.f32 %v2557_v48, %v2534_v40 }
 0x2dc   : > { %v2501_v51 = vadd.f32 %v5215_v5, %v2500_v39  ;;  %v2535_v58 = vmul.f32 %v5221_v10, %v5221_v10 }
 0x2dd   : > { %v5229_v18 = vpop.f32.mrb[36].mxu1  ;;  %v2416_v19 = vpop.f32.mrb[22].mxu0 }
 0x2de   : > { %v5234_v23 = vadd.f32 %v2416_v19, %v2036_v35  ;;  %v2073_v9 = vpop.f32.mrb[37].mxu1  ;;  %v3059_v24 = vpop.f32.mrb[23].mxu0  ;;  %v2502_v61 = vadd.f32 %v5221_v10, %v2501_v51  ;;  %v2559_v12 = vadd.f32 %v2558_v59, %v2535_v58 }
 0x2e0   : > { %v2536_v1 = vmul.f32 %v5234_v23, %v5234_v23  ;;  %v2503_v6 = vadd.f32 %v5234_v23, %v2502_v61 }
 0x2e1   : > { %v5239_v26 = vpop.f32.mrb[38].mxu1  ;;  %v2421_v27 = vpop.f32.mrb[24].mxu0 }
 0x2e2   : > { %v5244_v13 = vadd.f32 %v2421_v27, %v2041_v46  ;;  %v2078_v31 = vpop.f32.mrb[39].mxu1  ;;  %v3062_v44 = vpop.f32.mrb[25].mxu0  ;;  %v2560_v15 = vadd.f32 %v2559_v12, %v2536_v1 }
 0x2e4   : > { %v2537_v7 = vmul.f32 %v5244_v13, %v5244_v13  ;;  %v2504_v22 = vadd.f32 %v5244_v13, %v2503_v6 }
 0x2e5   : > { %v5249_v35 = vpop.f32.mrb[40].mxu1  ;;  %v2426_v36 = vpop.f32.mrb[26].mxu0 }
 0x2e6   : > { %v5254_v42 = vadd.f32 %v2426_v36, %v2046_v47  ;;  %v2083_v46 = vpop.f32.mrb[41].mxu1  ;;  %v3065_v43 = vpop.f32.mrb[27].mxu0  ;;  %v2561_v20 = vadd.f32 %v2560_v15, %v2537_v7 }
 0x2e8   : > { %v2538_v14 = vmul.f32 %v5254_v42, %v5254_v42  ;;  %v2505_v21 = vadd.f32 %v5254_v42, %v2504_v22 }
 0x2e9   : > { %v5259_v53 = vpop.f32.mrb[42].mxu1  ;;  %v2431_v57 = vpop.f32.mrb[28].mxu0 }
 0x2ea   : > { %v5264_v2 = vadd.f32 %v2431_v57, %v2051_v52  ;;  %v2088_v47 = vpop.f32.mrb[43].mxu1  ;;  %v3068_v3 = vpop.f32.mrb[29].mxu0  ;;  %v2562_v54 = vadd.f32 %v2561_v20, %v2538_v14 }
 0x2ec   : > { %v2539_v16 = vmul.f32 %v5264_v2, %v5264_v2  ;;  %v2506_v25 = vadd.f32 %v5264_v2, %v2505_v21 }
 0x2ed   : > { %v2091_v8 = vpop.f32.mrb[44].mxu1  ;;  %v2436_v11 = vpop.f32.mrb[30].mxu0 }
 0x2ee   : > { %v5273_v17 = vadd.f32 %v2436_v11, %v5209_v60  ;;  %v2093_v52 = vpop.f32.mrb[45].mxu1  ;;  %v3071_v19 = vpop.f32.mrb[31].mxu0  ;;  %v2563_v29 = vadd.f32 %v2562_v54, %v2539_v16 }
 0x2f0   : > { %v2540_v0 = vmul.f32 %v5273_v17, %v5273_v17  ;;  %v2507_v30 = vadd.f32 %v5273_v17, %v2506_v25 }
 0x2f1   : > { %v2096_v9 = vpop.f32.mrb[46].mxu1  ;;  %v2441_v24 = vpop.f32.mrb[32].mxu0 }
 0x2f2   : > { %v5282_v27 = vadd.f32 %v2441_v24, %v5213_v4  ;;  %v2098_v60 = vpop.f32.mrb[47].mxu1  ;;  %v3074_v28 = vpop.f32.mrb[33].mxu0  ;;  %v2564_v33 = vadd.f32 %v2563_v29, %v2540_v0 }
 0x2f4   : > { %v2541_v31 = vmul.f32 %v5282_v27, %v5282_v27  ;;  %v2508_v34 = vadd.f32 %v5282_v27, %v2507_v30 }
 0x2f5   : > { %v2101_v44 = vpop.f32.mrb[48].mxu1  ;;  %v2446_v32 = vpop.f32.mrb[34].mxu0 }
 0x2f6   : > { %v5289_v36 = vadd.f32 %v2446_v32, %v5217_v49  ;;  %v2103_v38 = vpop.f32.mrb[49].mxu1  ;;  %v3077_v39 = vpop.f32.mrb[35].mxu0  ;;  %v2565_v4 = vadd.f32 %v2564_v33, %v2541_v31 }
 0x2f8   : > { %v2509_v40 = vadd.f32 %v5289_v36, %v2508_v34  ;;  %v2542_v46 = vmul.f32 %v5289_v36, %v5289_v36 }
 0x2f9   : > { %v2106_v43 = vpop.f32.mrb[50].mxu1  ;;  %v2451_v48 = vpop.f32.mrb[36].mxu0 }
 0x2fa   : > { %v2566_v51 = vadd.f32 %v2565_v4, %v2542_v46  ;;  %v5295_v58 = vadd.f32 %v2451_v48, %v5229_v18  ;;  %v2108_v57 = vpop.f32.mrb[51].mxu1  ;;  %v3080_v59 = vpop.f32.mrb[37].mxu0 }
 0x2fc   : > { %v2510_v61 = vadd.f32 %v5295_v58, %v2509_v40  ;;  %v2543_v49 = vmul.f32 %v5295_v58, %v5295_v58 }
 0x2fd   : > { %v2111_v1 = vpop.f32.mrb[52].mxu1  ;;  %v2456_v47 = vpop.f32.mrb[38].mxu0 }
 0x2fe   : > { %v2567_v3 = vadd.f32 %v2566_v51, %v2543_v49  ;;  %v5301_v12 = vadd.f32 %v2456_v47, %v5239_v26  ;;  %v2113_v6 = vpop.f32.mrb[53].mxu1  ;;  %v3083_v7 = vpop.f32.mrb[39].mxu0 }
 0x300   : > { %v2511_v11 = vadd.f32 %v5301_v12, %v2510_v61  ;;  %v2544_v18 = vmul.f32 %v5301_v12, %v5301_v12 }
 0x301   : > { %v2461_v15 = vpop.f32.mrb[40].mxu0 }
 0x302   : > { %v2568_v22 = vadd.f32 %v2567_v3, %v2544_v18  ;;  %v5307_v14 = vadd.f32 %v2461_v15, %v5249_v35  ;;  %v3086_v52 = vpop.f32.mrb[41].mxu0 }
 0x304   : > { %v2512_v19 = vadd.f32 %v5307_v14, %v2511_v11  ;;  %v2545_v20 = vmul.f32 %v5307_v14, %v5307_v14 }
 0x305   : > { %v2466_v26 = vpop.f32.mrb[42].mxu0 }
 0x306   : > { %v2569_v21 = vadd.f32 %v2568_v22, %v2545_v20  ;;  %v5313_v16 = vadd.f32 %v2466_v26, %v5259_v53  ;;  %v3089_v24 = vpop.f32.mrb[43].mxu0 }
 0x308   : > { %v2513_v54 = vadd.f32 %v5313_v16, %v2512_v19  ;;  %v2546_v25 = vmul.f32 %v5313_v16, %v5313_v16 }
 0x309   : > { %v2471_v0 = vpop.f32.mrb[44].mxu0 }
 0x30a   : > { %v2570_v35 = vadd.f32 %v2569_v21, %v2546_v25  ;;  %v5318_v60 = vadd.f32 %v2471_v0, %v2091_v8  ;;  %v3092_v28 = vpop.f32.mrb[45].mxu0 }
 0x30c   : > { %v2514_v29 = vadd.f32 %v5318_v60, %v2513_v54  ;;  %v2547_v30 = vmul.f32 %v5318_v60, %v5318_v60 }
 0x30d   : > { %v2476_v31 = vpop.f32.mrb[46].mxu0 }
 0x30e   : > { %v2571_v32 = vadd.f32 %v2570_v35, %v2547_v30  ;;  %v5323_v53 = vadd.f32 %v2476_v31, %v2096_v9  ;;  %v3095_v33 = vpop.f32.mrb[47].mxu0 }
 0x310   : > { %v2515_v34 = vadd.f32 %v5323_v53, %v2514_v29  ;;  %v2548_v38 = vmul.f32 %v5323_v53, %v5323_v53 }
 0x311   : > { %v2481_v39 = vpop.f32.mrb[48].mxu0 }
 0x312   : > { %v2572_v4 = vadd.f32 %v2571_v32, %v2548_v38  ;;  %v5328_v8 = vadd.f32 %v2481_v39, %v2101_v44  ;;  %v3098_v40 = vpop.f32.mrb[49].mxu0 }
 0x314   : > { %v2516_v46 = vadd.f32 %v5328_v8, %v2515_v34  ;;  %v2549_v48 = vmul.f32 %v5328_v8, %v5328_v8  ;;  %v2590_v34 = vld [vmem:[%s775_s30] sm:$0x1] }
 0x315   : > { %v2486_v51 = vpop.f32.mrb[50].mxu0 }
 0x316   : > { %v2573_v57 = vadd.f32 %v2572_v4, %v2549_v48  ;;  %v5333_v9 = vadd.f32 %v2486_v51, %v2106_v43  ;;  %v3101_v59 = vpop.f32.mrb[51].mxu0  ;;  %v2592_v4 = vld [vmem:[%s778_s12] sm:$0x1] }
 0x318   : > { %v2517_v61 = vadd.f32 %v5333_v9, %v2516_v46  ;;  %v2550_v49 = vmul.f32 %v5333_v9, %v5333_v9 }
 0x319   : > { %v2491_v47 = vpop.f32.mrb[52].mxu0 }
 0x31a   : > { %v2574_v44 = vadd.f32 %v2573_v57, %v2550_v49  ;;  %v3402_v3 = vadd.f32 %v2491_v47, %v2111_v1  ;;  %v3104_v6 = vpop.f32.mrb[53].mxu0 }
 0x31c   : > { %v2519_v7 = vsel %vm2518_vm2, %v3402_v3, 0.0  ;;  %v2551_v11 = vmul.f32 %v3402_v3, %v3402_v3 }
 0x31d   : > { %v2520_v18 = vadd.f32 %v2519_v7, %v2517_v61 }
 0x31e   : > { %v2575_v15 = vsel %vm2518_vm2, %v2551_v11, 0.0 }
 0x31f   : > { %v2521_v22 = vrot.slane %v2520_v18, 4  ;;  %v2576_v52 = vadd.f32 %v2575_v15, %v2574_v44 }
 0x321   : > { %v2522_v19 = vadd.f32 %v2521_v22, %v2520_v18  ;;  %v2577_v43 = vrot.slane %v2576_v52, 4 }
 0x323   : > { %v2523_v20 = vrot.slane %v2522_v19, 2  ;;  %v2578_v26 = vadd.f32 %v2577_v43, %v2576_v52 }
 0x325   : > { %v2524_v21 = vadd.f32 %v2523_v20, %v2522_v19  ;;  %v2579_v24 = vrot.slane %v2578_v26, 2 }
 0x327   : > { %v2525_v54 = vrot.slane %v2524_v21, 1  ;;  %v2580_v25 = vadd.f32 %v2579_v24, %v2578_v26 }
 0x329   : > { %v2526_v0 = vadd.f32 %v2525_v54, %v2524_v21  ;;  %v2581_v35 = vrot.slane %v2580_v25, 1 }
 0x32b   : > { %v2582_v1 = vadd.f32 %v2581_v35, %v2580_v25  ;;  %v2583_v28 = vmul.f32 0.0051020407, %v2526_v0 }
 0x32d   : > { %v2584_v29 = vmul.f32 0.0051020407, %v2582_v1  ;;  %v2585_v30 = vmul.f32 %v2583_v28, %v2583_v28 }
 0x32f   : > { %v2586_v31 = vsub.f32 %v2584_v29, %v2585_v30 }
 0x331   : > { %v2587_v32 = vmax.f32 %v2586_v31, 0.0 }
 0x333   : > { %v2588_v33 = vadd.f32 1e-05, %v2587_v32 }
 0x335   : > { %3561 = vrsqrt.f32 %v2588_v33 }
 0x33f   : > { %v3562_v38 = vpop.eup %3561 }
 0x340   : > { %v2591_v39 = vmul.f32 %v3562_v38, %v2590_v34 }
 0x342   : > { %v2593_v40 = vmul.f32 %v2591_v39, %v2583_v28  ;;  %v2598_v46 = vrot.slane %v2591_v39, %v4326_v45 }
 0x344   : > { %v2594_v48 = vsub.f32 %v2592_v4, %v2593_v40  ;;  %v2599_v51 = vmul.f32 %v5197_v55, %v2598_v46  ;;  %v2600_v57 = vmul.f32 %v5199_v63, %v2598_v46  ;;  %v2601_v59 = vmul.f32 %v5201_v37, %v2598_v46 }
 0x345   : > { %v2602_v61 = vmul.f32 %v5203_v41, %v2598_v46  ;;  %v2603_v49 = vmul.f32 %v5205_v50, %v2598_v46  ;;  %v2604_v47 = vmul.f32 %v5207_v56, %v2598_v46  ;;  %v2605_v44 = vmul.f32 %v5211_v62, %v2598_v46 }
 0x346   : > { %v2606_v6 = vmul.f32 %v5215_v5, %v2598_v46  ;;  %v2607_v7 = vmul.f32 %v5221_v10, %v2598_v46  ;;  %v2613_v55 = vmul.f32 %v5282_v27, %v2598_v46  ;;  %v2614_v63 = vmul.f32 %v5289_v36, %v2598_v46 }
 0x347   : > { %v2615_v37 = vmul.f32 %v5295_v58, %v2598_v46  ;;  %v2616_v41 = vmul.f32 %v5301_v12, %v2598_v46  ;;  %v2617_v50 = vmul.f32 %v5307_v14, %v2598_v46  ;;  %v2618_v56 = vmul.f32 %v5313_v16, %v2598_v46 }
 0x348   : > { %v2619_v11 = vmul.f32 %v5318_v60, %v2598_v46  ;;  %v2620_v62 = vmul.f32 %v5323_v53, %v2598_v46  ;;  %v2621_v5 = vmul.f32 %v5328_v8, %v2598_v46  ;;  %v2608_v10 = vmul.f32 %v5234_v23, %v2598_v46 }
 0x349   : > { %v2622_v27 = vmul.f32 %v5333_v9, %v2598_v46  ;;  %v2623_v18 = vmul.f32 %v3402_v3, %v2598_v46  ;;  %v2628_v36 = vrot.slane %v2594_v48, %v4326_v45  ;;  %v2609_v58 = vmul.f32 %v5244_v13, %v2598_v46 }
 0x34a   : > { %v2610_v12 = vmul.f32 %v5254_v42, %v2598_v46  ;;  %v2611_v14 = vmul.f32 %v5264_v2, %v2598_v46  ;;  %v2612_v16 = vmul.f32 %v5273_v17, %v2598_v46 }
 0x34b   : > { %v2630_v60 = vadd.f32 %v2628_v36, %v2599_v51  ;;  %v2631_v53 = vadd.f32 %v2628_v36, %v2600_v57  ;;  %v2632_v15 = vadd.f32 %v2628_v36, %v2601_v59  ;;  %v2633_v8 = vadd.f32 %v2628_v36, %v2602_v61 }
 0x34c   : > { %v2634_v22 = vadd.f32 %v2628_v36, %v2603_v49  ;;  %v2635_v23 = vadd.f32 %v2628_v36, %v2604_v47  ;;  %v2636_v52 = vadd.f32 %v2628_v36, %v2605_v44  ;;  %v2637_v9 = vadd.f32 %v2628_v36, %v2606_v6 }
 0x34d   : > { %v2638_v3 = vadd.f32 %v2628_v36, %v2607_v7  ;;  %v2639_v19 = vadd.f32 %v2628_v36, %v2608_v10  ;;  %v2640_v45 = vadd.f32 %v2628_v36, %v2609_v58  ;;  %v2641_v43 = vadd.f32 %v2628_v36, %v2610_v12  ;;  %2655 = vst [vmem:[%s5377_s24] sm:$0xff] %v2630_v60 }
 0x34e   : > { %2656 = vst [vmem:[%s5377_s24 + $0x8] sm:$0xff] %v2631_v53  ;;  %2657 = vst [vmem:[%s5377_s24 + $0x10] sm:$0xff] %v2632_v15  ;;  %v2642_v13 = vadd.f32 %v2628_v36, %v2611_v14  ;;  %v2643_v42 = vadd.f32 %v2628_v36, %v2612_v16  ;;  %v2644_v2 = vadd.f32 %v2628_v36, %v2613_v55 }
 0x34f   : > { %2658 = vst [vmem:[%s5377_s24 + $0x18] sm:$0xff] %v2633_v8  ;;  %v2645_v17 = vadd.f32 %v2628_v36, %v2614_v63  ;;  %2659 = vst [vmem:[%s5377_s24 + $0x20] sm:$0xff] %v2634_v22  ;;  %v2646_v20 = vadd.f32 %v2628_v36, %v2615_v37  ;;  %v2647_v26 = vadd.f32 %v2628_v36, %v2616_v41 }
 0x350   : > { %2660 = vst [vmem:[%s5377_s24 + $0x28] sm:$0xff] %v2635_v23  ;;  %2661 = vst [vmem:[%s5377_s24 + $0x30] sm:$0xff] %v2636_v52  ;;  %v2648_v21 = vadd.f32 %v2628_v36, %v2617_v50  ;;  %v2649_v24 = vadd.f32 %v2628_v36, %v2618_v56  ;;  %v2650_v54 = vadd.f32 %v2628_v36, %v2619_v11 }
 0x351   : > { %2662 = vst [vmem:[%s5377_s24 + $0x38] sm:$0xff] %v2637_v9  ;;  %2663 = vst [vmem:[%s5377_s24 + $0x40] sm:$0xff] %v2638_v3  ;;  %v2651_v25 = vadd.f32 %v2628_v36, %v2620_v62  ;;  %v2652_v0 = vadd.f32 %v2628_v36, %v2621_v5  ;;  %v2653_v35 = vadd.f32 %v2628_v36, %v2622_v27 }
 0x352   : > { %2664 = vst [vmem:[%s5377_s24 + $0x48] sm:$0xff] %v2639_v19  ;;  %2665 = vst [vmem:[%s5377_s24 + $0x50] sm:$0xff] %v2640_v45  ;;  %v2654_v1 = vadd.f32 %v2628_v36, %v2623_v18 }
 0x353   : > { %2666 = vst [vmem:[%s5377_s24 + $0x58] sm:$0xff] %v2641_v43  ;;  %2667 = vst [vmem:[%s5377_s24 + $0x60] sm:$0xff] %v2642_v13  ;;  %2686 = sbr.rel (!%p3661_p5) target bundleno = 871 (0x367), region = 90 }
 0x354   : > { %2668 = vst [vmem:[%s5377_s24 + $0x68] sm:$0xff] %v2643_v42  ;;  %2669 = vst [vmem:[%s5377_s24 + $0x70] sm:$0xff] %v2644_v2  ;;  %v2764_v28 = vld [vmem:[%s5377_s24] sm:$0xff] (%p3661_p5) }
 0x355   : > { %2670 = vst [vmem:[%s5377_s24 + $0x78] sm:$0xff] %v2645_v17  ;;  %2671 = vst [vmem:[%s5377_s24 + $0x80] sm:$0xff] %v2646_v20  ;;  %v2766_v29 = vld [vmem:[%s5377_s24 + $0x8] sm:$0xff] (%p3661_p5)  ;;  %v2768_v30 = vld [vmem:[%s5377_s24 + $0x10] sm:$0xff] (%p3661_p5) }
 0x356   : > { %2672 = vst [vmem:[%s5377_s24 + $0x88] sm:$0xff] %v2647_v26  ;;  %2673 = vst [vmem:[%s5377_s24 + $0x90] sm:$0xff] %v2648_v21  ;;  %v2770_v31 = vld [vmem:[%s5377_s24 + $0x18] sm:$0xff] (%p3661_p5)  ;;  %v2772_v32 = vld [vmem:[%s5377_s24 + $0x20] sm:$0xff] (%p3661_p5) }
 0x357   : > { %2674 = vst [vmem:[%s5377_s24 + $0x98] sm:$0xff] %v2649_v24  ;;  %2675 = vst [vmem:[%s5377_s24 + $0xa0] sm:$0xff] %v2650_v54  ;;  %v2774_v33 = vld [vmem:[%s5377_s24 + $0x28] sm:$0xff] (%p3661_p5)  ;;  %v2776_v34 = vld [vmem:[%s5377_s24 + $0x30] sm:$0xff] (%p3661_p5) }
 0x358   : > { %2676 = vst [vmem:[%s5377_s24 + $0xa8] sm:$0xff] %v2651_v25  ;;  %2677 = vst [vmem:[%s5377_s24 + $0xb0] sm:$0xff] %v2652_v0  ;;  %v2778_v38 = vld [vmem:[%s5377_s24 + $0x38] sm:$0xff] (%p3661_p5)  ;;  %v2780_v39 = vld [vmem:[%s5377_s24 + $0x40] sm:$0xff] (%p3661_p5) }
 0x359   : > { %2678 = vst [vmem:[%s5377_s24 + $0xb8] sm:$0xff] %v2653_v35  ;;  %2679 = vst [vmem:[%s5377_s24 + $0xc0] sm:$0xf] %v2654_v1  ;;  %v2782_v4 = vld [vmem:[%s5377_s24 + $0x48] sm:$0xff] (%p3661_p5)  ;;  %v2784_v40 = vld [vmem:[%s5377_s24 + $0x50] sm:$0xff] (%p3661_p5) }
 0x35a   : > { %2765 = vst [vmem:[%s5413_s18] sm:$0xff] %v2764_v28  ;;  %2767 = vst [vmem:[%s5413_s18 + $0x38] sm:$0xff] %v2766_v29  ;;  %v2786_v46 = vld [vmem:[%s5377_s24 + $0x58] sm:$0xff]  ;;  %v2788_v48 = vld [vmem:[%s5377_s24 + $0x60] sm:$0xff] }
 0x35b   : > { %2769 = vst [vmem:[%s5413_s18 + $0x70] sm:$0xff] %v2768_v30  ;;  %2771 = vst [vmem:[%s5413_s18 + $0xa8] sm:$0xff] %v2770_v31  ;;  %v2790_v51 = vld [vmem:[%s5377_s24 + $0x68] sm:$0xff]  ;;  %v2792_v57 = vld [vmem:[%s5377_s24 + $0x70] sm:$0xff] }
 0x35c   : > { %2773 = vst [vmem:[%s5413_s18 + $0xe0] sm:$0xff] %v2772_v32  ;;  %2775 = vst [vmem:[%s5413_s18 + $0x118] sm:$0xff] %v2774_v33  ;;  %v2794_v59 = vld [vmem:[%s5377_s24 + $0x78] sm:$0xff]  ;;  %v2796_v61 = vld [vmem:[%s5377_s24 + $0x80] sm:$0xff] }
 0x35d   : > { %2777 = vst [vmem:[%s5413_s18 + $0x150] sm:$0xff] %v2776_v34  ;;  %2779 = vst [vmem:[%s5413_s18 + $0x188] sm:$0xff] %v2778_v38  ;;  %v2798_v49 = vld [vmem:[%s5377_s24 + $0x88] sm:$0xff]  ;;  %v2800_v47 = vld [vmem:[%s5377_s24 + $0x90] sm:$0xff] }
 0x35e   : > { %2781 = vst [vmem:[%s5413_s18 + $0x1c0] sm:$0xff] %v2780_v39  ;;  %2783 = vst [vmem:[%s5413_s18 + $0x1f8] sm:$0xff] %v2782_v4  ;;  %v2802_v44 = vld [vmem:[%s5377_s24 + $0x98] sm:$0xff]  ;;  %v2804_v6 = vld [vmem:[%s5377_s24 + $0xa0] sm:$0xff] }
 0x35f   : > { %2785 = vst [vmem:[%s5413_s18 + $0x230] sm:$0xff] %v2784_v40  ;;  %2787 = vst [vmem:[%s5413_s18 + $0x268] sm:$0xff] %v2786_v46  ;;  %v2806_v7 = vld [vmem:[%s5377_s24 + $0xa8] sm:$0xff]  ;;  %v2808_v55 = vld [vmem:[%s5377_s24 + $0xb0] sm:$0xff] }
 0x360   : > { %2789 = vst [vmem:[%s5413_s18 + $0x2a0] sm:$0xff] %v2788_v48  ;;  %2791 = vst [vmem:[%s5413_s18 + $0x2d8] sm:$0xff] %v2790_v51  ;;  %v2810_v63 = vld [vmem:[%s5377_s24 + $0xb8] sm:$0xff]  ;;  %v2812_v37 = vld [vmem:[%s5377_s24 + $0xc0] sm:$0xff] }
 0x361   : > { %2793 = vst [vmem:[%s5413_s18 + $0x310] sm:$0xff] %v2792_v57  ;;  %2795 = vst [vmem:[%s5413_s18 + $0x348] sm:$0xff] %v2794_v59 }
 0x362   : > { %2797 = vst [vmem:[%s5413_s18 + $0x380] sm:$0xff] %v2796_v61  ;;  %2799 = vst [vmem:[%s5413_s18 + $0x3b8] sm:$0xff] %v2798_v49 }
 0x363   : > { %2801 = vst [vmem:[%s5413_s18 + $0x3f0] sm:$0xff] %v2800_v47  ;;  %2803 = vst [vmem:[%s5413_s18 + $0x428] sm:$0xff] %v2802_v44 }
 0x364   : > { %2805 = vst [vmem:[%s5413_s18 + $0x460] sm:$0xff] %v2804_v6  ;;  %2807 = vst [vmem:[%s5413_s18 + $0x498] sm:$0xff] %v2806_v7 }
 0x365   : > { %2809 = vst [vmem:[%s5413_s18 + $0x4d0] sm:$0xff] %v2808_v55  ;;  %2811 = vst [vmem:[%s5413_s18 + $0x508] sm:$0xff] %v2810_v63 }
 0x366   : > { %2813 = vst [vmem:[%s5413_s18 + $0x540] sm:$0xff] %v2812_v37 }
 0x367 PF: > { %p14_p11 = scmp.ge.s32.totalorder %s3649_s28, 9   ;;  %s5481_s24 = smov %s3581_s25 }
 0x368   : > { %s5482_s25 = smov %s3659_s8  ;;  %s5483_s26 = smov %s3649_s28 }
 0x369   :  { %16 = sbr.rel (!%p14_p11) target bundleno = 2 (0x2), region = 165 }

</bundles_post_ra>
